<compile_context>
chip_gen: v7x
topology: tpu7x:2x2x1
jax: 0.10.0
libtpu: 0.0.40
codegen_flags: <defaults>
</compile_context>

<pallas_src>
import jax
import jax.numpy as jnp
from jax import lax
from jax.experimental import pallas as pl
from jax.experimental.pallas import tpu as pltpu


def _round_up(x, m):
    return ((x + m - 1) // m) * m


# ---------------------------------------------------------------------------
# Pallas kernel: full twin-Q forward pass for one batch tile.
# ---------------------------------------------------------------------------
def critic_kernel(state_ref, action_ref, w1_ref, b1_ref, w2_ref, w3_ref,
                  b3_ref, out_ref, x_scr):
    sd = state_ref.shape[1]
    ad = action_ref.shape[1]
    h1p = w2_ref.shape[1]                    # padded hidden 1 (512)
    h2p = w2_ref.shape[2]                    # padded hidden 2 (384)

    # Build the padded [state | action | 0] input tile in VMEM (f32 scratch,
    # masked lane stores), then cast once to bf16 for the MXU.
    x_scr[...] = jnp.zeros_like(x_scr)
    x_scr[:, 0:sd] = state_ref[...]
    x_scr[:, sd:sd + ad] = action_ref[...]
    x = x_scr[...].astype(jnp.bfloat16)      # (TB, 128)

    # One wide, lane-aligned matmul: both heads' layer-1 pre-activations plus
    # both heads' layer-2 action contributions.
    #   cols [0,      h1p)          : head-1 layer-1 pre-activation
    #   cols [h1p,    2*h1p)        : head-2 layer-1 pre-activation
    #   cols [2*h1p,  2*h1p+h2p)    : head-1 layer-2 action term (+ b12)
    #   cols [2*h1p+h2p, end)       : head-2 layer-2 action term (+ b22)
    z = jnp.dot(x, w1_ref[...], preferred_element_type=jnp.float32)
    z = z + b1_ref[...]                      # f32 biases, broadcast over batch

    h1_1 = jnp.maximum(z[:, 0:h1p], 0.0).astype(jnp.bfloat16)
    h1_2 = jnp.maximum(z[:, h1p:2 * h1p], 0.0).astype(jnp.bfloat16)
    act2_1 = z[:, 2 * h1p:2 * h1p + h2p]
    act2_2 = z[:, 2 * h1p + h2p:2 * h1p + 2 * h2p]

    # Layer 2 (per head): relu(h1 @ W2 + action-term).
    h2_1 = jnp.maximum(
        jnp.dot(h1_1, w2_ref[0], preferred_element_type=jnp.float32) + act2_1,
        0.0)
    h2_2 = jnp.maximum(
        jnp.dot(h1_2, w2_ref[1], preferred_element_type=jnp.float32) + act2_2,
        0.0)

    # Layer 3: N=1 matmuls as VPU multiply + lane reductions; single fused
    # (TB, 2) store.
    w3 = w3_ref[...]                          # (2, h2p) f32
    q1 = jnp.sum(h2_1 * w3[0:1, :], axis=-1, keepdims=True)
    q2 = jnp.sum(h2_2 * w3[1:2, :], axis=-1, keepdims=True)
    lane = lax.broadcasted_iota(jnp.int32, out_ref.shape, 1)
    q = jnp.where(lane == 0, q1, q2) + b3_ref[...]
    out_ref[...] = q.astype(out_ref.dtype)


# ---------------------------------------------------------------------------
# Parameter initialization (mimics PyTorch nn.Linear default init; weights
# stored as (in_features, out_features), concat-weights pre-split).
# ---------------------------------------------------------------------------
def init_linear(key, fan_in, fan_out):
    kw, kb = jax.random.split(key)
    bound = 1.0 / jnp.sqrt(jnp.float32(fan_in))
    w = jax.random.uniform(kw, (fan_in, fan_out), jnp.float32, -bound, bound)
    b = jax.random.uniform(kb, (1, fan_out), jnp.float32, -bound, bound)
    return w, b


def init_critic_params(key, state_dims, action_dims, h1=400, h2=300):
    keys = jax.random.split(key, 6)
    params = {}
    w11, b11 = init_linear(keys[0], state_dims + action_dims, h1)
    w12, b12 = init_linear(keys[1], h1 + action_dims, h2)
    w13, b13 = init_linear(keys[2], h2, 1)
    w21, b21 = init_linear(keys[3], state_dims + action_dims, h1)
    w22, b22 = init_linear(keys[4], h1 + action_dims, h2)
    w23, b23 = init_linear(keys[5], h2, 1)

    params["w11s"], params["w11a"] = w11[:state_dims], w11[state_dims:]
    params["b11"] = b11
    params["w12h"], params["w12a"] = w12[:h1], w12[h1:]
    params["b12"] = b12
    params["w13"], params["b13"] = w13, b13

    params["w21s"], params["w21a"] = w21[:state_dims], w21[state_dims:]
    params["b21"] = b21
    params["w22h"], params["w22a"] = w22[:h1], w22[h1:]
    params["b22"] = b22
    params["w23"], params["b23"] = w23, b23
    return params


# ---------------------------------------------------------------------------
# Pack parameters into the fused / padded / bf16 kernel layout (done once).
# ---------------------------------------------------------------------------
def pack_critic_params(p, state_dims, action_dims, h1=400, h2=300):
    sd, ad = state_dims, action_dims
    sa = sd + ad
    kp = _round_up(sa, 128)
    h1p = _round_up(h1, 128)
    h2p = _round_up(h2, 128)
    n = 2 * h1p + 2 * h2p

    w1 = jnp.zeros((kp, n), jnp.float32)
    w1 = w1.at[:sd, 0:h1].set(p["w11s"])
    w1 = w1.at[sd:sa, 0:h1].set(p["w11a"])
    w1 = w1.at[:sd, h1p:h1p + h1].set(p["w21s"])
    w1 = w1.at[sd:sa, h1p:h1p + h1].set(p["w21a"])
    w1 = w1.at[sd:sa, 2 * h1p:2 * h1p + h2].set(p["w12a"])
    w1 = w1.at[sd:sa, 2 * h1p + h2p:2 * h1p + h2p + h2].set(p["w22a"])

    b1 = jnp.zeros((1, n), jnp.float32)
    b1 = b1.at[:, 0:h1].set(p["b11"])
    b1 = b1.at[:, h1p:h1p + h1].set(p["b21"])
    b1 = b1.at[:, 2 * h1p:2 * h1p + h2].set(p["b12"])
    b1 = b1.at[:, 2 * h1p + h2p:2 * h1p + h2p + h2].set(p["b22"])

    w2_1 = jnp.zeros((h1p, h2p), jnp.float32).at[:h1, :h2].set(p["w12h"])
    w2_2 = jnp.zeros((h1p, h2p), jnp.float32).at[:h1, :h2].set(p["w22h"])
    w2 = jnp.stack([w2_1, w2_2], axis=0)               # (2, h1p, h2p)

    w3 = jnp.zeros((2, h2p), jnp.float32)
    w3 = w3.at[0, :h2].set(p["w13"][:, 0])
    w3 = w3.at[1, :h2].set(p["w23"][:, 0])
    b3 = jnp.concatenate([p["b13"], p["b23"]], axis=1)  # (1, 2)

    return {
        "w1": w1.astype(jnp.bfloat16),
        "b1": b1,
        "w2": w2.astype(jnp.bfloat16),
        "w3": w3,
        "b3": b3,
    }


# ---------------------------------------------------------------------------
# Wrapper: batch-tiled grid, weights VMEM-resident (constant index maps).
# ---------------------------------------------------------------------------
@jax.jit
def critic_forward(state, action, packed):
    b, sd = state.shape
    ad = action.shape[1]
    kp, n = packed["w1"].shape
    _, h1p, h2p = packed["w2"].shape

    tb = min(128, _round_up(b, 8))            # batch tile (128 for training B)
    grid = (pl.cdiv(b, tb),)

    q12 = pl.pallas_call(
        critic_kernel,
        out_shape=jax.ShapeDtypeStruct((b, 2), jnp.float32),
        grid=grid,
        in_specs=[
            pl.BlockSpec((tb, sd), lambda i: (i, 0)),          # state (tiled)
            pl.BlockSpec((tb, ad), lambda i: (i, 0)),          # action (tiled)
            pl.BlockSpec((kp, n), lambda i: (0, 0)),           # w1 (resident)
            pl.BlockSpec((1, n), lambda i: (0, 0)),            # b1 (resident)
            pl.BlockSpec((2, h1p, h2p), lambda i: (0, 0, 0)),  # w2 (resident)
            pl.BlockSpec((2, h2p), lambda i: (0, 0)),          # w3 (resident)
            pl.BlockSpec((1, 2), lambda i: (0, 0)),            # b3 (resident)
        ],
        out_specs=pl.BlockSpec((tb, 2), lambda i: (i, 0)),
        scratch_shapes=[pltpu.VMEM((tb, kp), jnp.float32)],
        compiler_params=pltpu.CompilerParams(
            dimension_semantics=("parallel",)),
    )(state, action, packed["w1"], packed["b1"], packed["w2"],
      packed["w3"], packed["b3"])

    return q12[:, 0:1], q12[:, 1:2]


def critic_q1(state, action, packed):
    """Equivalent of Critic.q_update_pi: only the first head's Q-value."""
    q1, _ = critic_forward(state, action, packed)
    return q1


# ---------------------------------------------------------------------------
# References.
# ---------------------------------------------------------------------------
def critic_reference_f32(state, action, p):
    """Pure-f32 reference matching the PyTorch forward exactly."""
    def head(ws, wa, b1, wh, wa2, b2, w3, b3):
        h1 = jax.nn.relu(state @ ws + action @ wa + b1)
        h2 = jax.nn.relu(h1 @ wh + action @ wa2 + b2)
        return h2 @ w3 + b3

    q1 = head(p["w11s"], p["w11a"], p["b11"], p["w12h"], p["w12a"], p["b12"],
              p["w13"], p["b13"])
    q2 = head(p["w21s"], p["w21a"], p["b21"], p["w22h"], p["w22a"], p["b22"],
              p["w23"], p["b23"])
    return q1, q2


def critic_reference_bf16(state, action, p):
    """Reference mirroring the kernel's bf16 rounding (f32 accumulation)."""
    bf = lambda t: t.astype(jnp.bfloat16).astype(jnp.float32)
    s, a = bf(state), bf(action)

    def head(ws, wa, b1, wh, wa2, b2, w3, b3):
        h1 = jax.nn.relu(s @ bf(ws) + a @ bf(wa) + b1)
        h1 = bf(h1)
        h2 = jax.nn.relu(h1 @ bf(wh) + a @ bf(wa2) + b2)
        return h2 @ w3 + b3

    q1 = head(p["w11s"], p["w11a"], p["b11"], p["w12h"], p["w12a"], p["b12"],
              p["w13"], p["b13"])
    q2 = head(p["w21s"], p["w21a"], p["b21"], p["w22h"], p["w22a"], p["b22"],
              p["w23"], p["b23"])
    return q1, q2


if __name__ == "__main__":
    key = jax.random.PRNGKey(0)
    k_param, k_state, k_action = jax.random.split(key, 3)

    state_dims = 16
    action_dims = 8

    params = init_critic_params(k_param, state_dims, action_dims)
    packed = pack_critic_params(params, state_dims, action_dims)

    # --- small inference-style batch (single grid step) ---
    batch = 8
    state = jax.random.normal(k_state, (batch, state_dims), jnp.float32)
    action = jax.random.normal(k_action, (batch, action_dims), jnp.float32)

    q1, q2 = critic_forward(state, action, packed)
    jax.block_until_ready((q1, q2))
    assert q1.shape == (batch, 1) and q2.shape == (batch, 1)

    q1_bf, q2_bf = critic_reference_bf16(state, action, params)
    assert jnp.allclose(q1, q1_bf, atol=2e-3, rtol=2e-3)
    assert jnp.allclose(q2, q2_bf, atol=2e-3, rtol=2e-3)

    q1_f32, q2_f32 = critic_reference_f32(state, action, params)
    assert jnp.allclose(q1, q1_f32, atol=1e-1, rtol=1e-1)
    assert jnp.allclose(q2, q2_f32, atol=1e-1, rtol=1e-1)

    # --- training-style batch (exercises the batch grid / parallel axis) ---
    batch_l = 256
    ks2, ka2 = jax.random.split(jax.random.PRNGKey(1))
    state_l = jax.random.normal(ks2, (batch_l, state_dims), jnp.float32)
    action_l = jax.random.normal(ka2, (batch_l, action_dims), jnp.float32)

    q1l, q2l = critic_forward(state_l, action_l, packed)
    jax.block_until_ready((q1l, q2l))
    assert q1l.shape == (batch_l, 1) and q2l.shape == (batch_l, 1)

    q1l_bf, q2l_bf = critic_reference_bf16(state_l, action_l, params)
    assert jnp.allclose(q1l, q1l_bf, atol=2e-3, rtol=2e-3)
    assert jnp.allclose(q2l, q2l_bf, atol=2e-3, rtol=2e-3)

    print("KERNEL_OK")
</pallas_src>

<mosaic_0001>
module attributes {stable_mosaic.version = 11 : i64} {
  func.func @critic_kernel(%arg0: i32, %arg1: memref<8x16xf32, #tpu.memory_space<vmem>>, %arg2: memref<8x8xf32, #tpu.memory_space<vmem>>, %arg3: memref<128x1792xbf16, #tpu.memory_space<vmem>>, %arg4: memref<1x1792xf32, #tpu.memory_space<vmem>>, %arg5: memref<2x512x384xbf16, #tpu.memory_space<vmem>>, %arg6: memref<2x384xf32, #tpu.memory_space<vmem>>, %arg7: memref<1x2xf32, #tpu.memory_space<vmem>>, %arg8: memref<8x2xf32, #tpu.memory_space<vmem>>, %arg9: memref<8x128xf32, #tpu.memory_space<vmem>>) attributes {dimension_semantics = [#tpu.dimension_semantics<parallel>], iteration_bounds = array<i64: 1>, scalar_prefetch = 0 : i64, scratch_operands = 1 : i64, tpu.core_type = #tpu.core_type<tc>, window_params = [{transform_indices = @transform_0, window_bounds = array<i64: 8, 16>}, {transform_indices = @transform_1, window_bounds = array<i64: 8, 8>}, {pipeline_mode = #tpu.pipeline_mode<synchronous>, transform_indices = @transform_2, window_bounds = array<i64: 128, 1792>}, {pipeline_mode = #tpu.pipeline_mode<synchronous>, transform_indices = @transform_3, window_bounds = array<i64: 1, 1792>}, {pipeline_mode = #tpu.pipeline_mode<synchronous>, transform_indices = @transform_4, window_bounds = array<i64: 2, 512, 384>}, {pipeline_mode = #tpu.pipeline_mode<synchronous>, transform_indices = @transform_5, window_bounds = array<i64: 2, 384>}, {pipeline_mode = #tpu.pipeline_mode<synchronous>, transform_indices = @transform_6, window_bounds = array<i64: 1, 2>}, {transform_indices = @transform_7, window_bounds = array<i64: 8, 2>}]} {
    %cst = arith.constant 0.000000e+00 : f32
    %0 = vector.broadcast %cst : f32 to vector<8x128xf32>
    %c0 = arith.constant 0 : index
    %c0_0 = arith.constant 0 : index
    %1 = vector.load %arg9[%c0, %c0_0] : memref<8x128xf32, #tpu.memory_space<vmem>>, vector<8x128xf32>
    tpu.vector_store %arg9[%c0, %c0_0], %0 {strides = array<i32>} : memref<8x128xf32, #tpu.memory_space<vmem>>, vector<8x128xf32>,
    %c0_1 = arith.constant 0 : index
    %c0_2 = arith.constant 0 : index
    %2 = vector.load %arg1[%c0_1, %c0_2] : memref<8x16xf32, #tpu.memory_space<vmem>>, vector<8x16xf32>
    %c0_3 = arith.constant 0 : index
    %c0_4 = arith.constant 0 : index
    %3 = vector.load %arg9[%c0_3, %c0_4] : memref<8x128xf32, #tpu.memory_space<vmem>>, vector<8x16xf32>
    tpu.vector_store %arg9[%c0_3, %c0_4], %2 {strides = array<i32>} : memref<8x128xf32, #tpu.memory_space<vmem>>, vector<8x16xf32>,
    %c0_5 = arith.constant 0 : index
    %c0_6 = arith.constant 0 : index
    %4 = vector.load %arg2[%c0_5, %c0_6] : memref<8x8xf32, #tpu.memory_space<vmem>>, vector<8x8xf32>
    %c0_7 = arith.constant 0 : index
    %c16 = arith.constant 16 : index
    %5 = vector.load %arg9[%c0_7, %c16] : memref<8x128xf32, #tpu.memory_space<vmem>>, vector<8x8xf32>
    tpu.vector_store %arg9[%c0_7, %c16], %4 {strides = array<i32>} : memref<8x128xf32, #tpu.memory_space<vmem>>, vector<8x8xf32>,
    %c0_8 = arith.constant 0 : index
    %c0_9 = arith.constant 0 : index
    %6 = vector.load %arg9[%c0_8, %c0_9] : memref<8x128xf32, #tpu.memory_space<vmem>>, vector<8x128xf32>
    %7 = arith.truncf %6 : vector<8x128xf32> to vector<8x128xbf16>
    %c0_10 = arith.constant 0 : index
    %c0_11 = arith.constant 0 : index
    %8 = vector.load %arg3[%c0_10, %c0_11] : memref<128x1792xbf16, #tpu.memory_space<vmem>>, vector<128x1792xbf16>
    %cst_12 = arith.constant dense<0.000000e+00> : vector<8x1792xf32>
    %9 = tpu.matmul %7, %8, %cst_12 {dimension_numbers = #tpu.dot_dimension_numbers<[1], [0], [0], [1], [0, 0, 1, 1], [], []>} : vector<8x128xbf16>, vector<128x1792xbf16>, vector<8x1792xf32> -> vector<8x1792xf32>
    %c0_13 = arith.constant 0 : index
    %c0_14 = arith.constant 0 : index
    %10 = vector.load %arg4[%c0_13, %c0_14] : memref<1x1792xf32, #tpu.memory_space<vmem>>, vector<1x1792xf32>
    %11 = vector.broadcast %10 : vector<1x1792xf32> to vector<8x1792xf32>
    %12 = arith.addf %9, %11 : vector<8x1792xf32>
    %13 = vector.extract_strided_slice %12 {offsets = [0, 0], sizes = [8, 512], strides = [1, 1]} : vector<8x1792xf32> to vector<8x512xf32>
    %cst_15 = arith.constant 0.000000e+00 : f32
    %14 = vector.broadcast %cst_15 : f32 to vector<8x512xf32>
    %15 = arith.maximumf %13, %14 : vector<8x512xf32>
    %16 = arith.truncf %15 : vector<8x512xf32> to vector<8x512xbf16>
    %17 = vector.extract_strided_slice %12 {offsets = [0, 512], sizes = [8, 512], strides = [1, 1]} : vector<8x1792xf32> to vector<8x512xf32>
    %cst_16 = arith.constant 0.000000e+00 : f32
    %18 = vector.broadcast %cst_16 : f32 to vector<8x512xf32>
    %19 = arith.maximumf %17, %18 : vector<8x512xf32>
    %20 = arith.truncf %19 : vector<8x512xf32> to vector<8x512xbf16>
    %21 = vector.extract_strided_slice %12 {offsets = [0, 1024], sizes = [8, 384], strides = [1, 1]} : vector<8x1792xf32> to vector<8x384xf32>
    %22 = vector.extract_strided_slice %12 {offsets = [0, 1408], sizes = [8, 384], strides = [1, 1]} : vector<8x1792xf32> to vector<8x384xf32>
    %c0_17 = arith.constant 0 : index
    %c0_18 = arith.constant 0 : index
    %c0_19 = arith.constant 0 : index
    %23 = vector.load %arg5[%c0_17, %c0_18, %c0_19] : memref<2x512x384xbf16, #tpu.memory_space<vmem>>, vector<1x512x384xbf16>
    %24 = vector.shape_cast %23 : vector<1x512x384xbf16> to vector<512x384xbf16>
    %cst_20 = arith.constant dense<0.000000e+00> : vector<8x384xf32>
    %25 = tpu.matmul %16, %24, %cst_20 {dimension_numbers = #tpu.dot_dimension_numbers<[1], [0], [0], [1], [0, 0, 1, 1], [], []>} : vector<8x512xbf16>, vector<512x384xbf16>, vector<8x384xf32> -> vector<8x384xf32>
    %26 = arith.addf %25, %21 : vector<8x384xf32>
    %cst_21 = arith.constant 0.000000e+00 : f32
    %27 = vector.broadcast %cst_21 : f32 to vector<8x384xf32>
    %28 = arith.maximumf %26, %27 : vector<8x384xf32>
    %c1 = arith.constant 1 : index
    %c0_22 = arith.constant 0 : index
    %c0_23 = arith.constant 0 : index
    %29 = vector.load %arg5[%c1, %c0_22, %c0_23] : memref<2x512x384xbf16, #tpu.memory_space<vmem>>, vector<1x512x384xbf16>
    %30 = vector.shape_cast %29 : vector<1x512x384xbf16> to vector<512x384xbf16>
    %cst_24 = arith.constant dense<0.000000e+00> : vector<8x384xf32>
    %31 = tpu.matmul %20, %30, %cst_24 {dimension_numbers = #tpu.dot_dimension_numbers<[1], [0], [0], [1], [0, 0, 1, 1], [], []>} : vector<8x512xbf16>, vector<512x384xbf16>, vector<8x384xf32> -> vector<8x384xf32>
    %32 = arith.addf %31, %22 : vector<8x384xf32>
    %cst_25 = arith.constant 0.000000e+00 : f32
    %33 = vector.broadcast %cst_25 : f32 to vector<8x384xf32>
    %34 = arith.maximumf %32, %33 : vector<8x384xf32>
    %c0_26 = arith.constant 0 : index
    %c0_27 = arith.constant 0 : index
    %35 = vector.load %arg6[%c0_26, %c0_27] : memref<2x384xf32, #tpu.memory_space<vmem>>, vector<2x384xf32>
    %36 = vector.extract_strided_slice %35 {offsets = [0, 0], sizes = [1, 384], strides = [1, 1]} : vector<2x384xf32> to vector<1x384xf32>
    %37 = vector.broadcast %36 : vector<1x384xf32> to vector<8x384xf32>
    %38 = arith.mulf %28, %37 : vector<8x384xf32>
    %cst_28 = arith.constant dense<0.000000e+00> : vector<8xf32>
    %39 = vector.multi_reduction <add>, %38, %cst_28 [1] : vector<8x384xf32> to vector<8xf32>
    %40 = vector.shape_cast %39 : vector<8xf32> to vector<8x1xf32>
    %41 = vector.extract_strided_slice %35 {offsets = [1, 0], sizes = [1, 384], strides = [1, 1]} : vector<2x384xf32> to vector<1x384xf32>
    %42 = vector.broadcast %41 : vector<1x384xf32> to vector<8x384xf32>
    %43 = arith.mulf %34, %42 : vector<8x384xf32>
    %cst_29 = arith.constant dense<0.000000e+00> : vector<8xf32>
    %44 = vector.multi_reduction <add>, %43, %cst_29 [1] : vector<8x384xf32> to vector<8xf32>
    %45 = vector.shape_cast %44 : vector<8xf32> to vector<8x1xf32>
    %46 = tpu.iota {dimensions = array<i32: 1>} : vector<8x2xi32>
    %c0_i32 = arith.constant 0 : i32
    %47 = vector.broadcast %c0_i32 : i32 to vector<8x2xi32>
    %48 = arith.cmpi eq, %46, %47 : vector<8x2xi32>
    %49 = vector.shape_cast %40 : vector<8x1xf32> to vector<8x1xf32>
    %50 = vector.broadcast %49 : vector<8x1xf32> to vector<8x2xf32>
    %51 = vector.shape_cast %45 : vector<8x1xf32> to vector<8x1xf32>
    %52 = vector.broadcast %51 : vector<8x1xf32> to vector<8x2xf32>
    %53 = arith.select %48, %50, %52 : vector<8x2xi1>, vector<8x2xf32>
    %c0_30 = arith.constant 0 : index
    %c0_31 = arith.constant 0 : index
    %54 = vector.load %arg7[%c0_30, %c0_31] : memref<1x2xf32, #tpu.memory_space<vmem>>, vector<1x2xf32>
    %55 = vector.broadcast %54 : vector<1x2xf32> to vector<8x2xf32>
    %56 = arith.addf %53, %55 : vector<8x2xf32>
    %c0_32 = arith.constant 0 : index
    %c0_33 = arith.constant 0 : index
    %57 = vector.load %arg8[%c0_32, %c0_33] : memref<8x2xf32, #tpu.memory_space<vmem>>, vector<8x2xf32>
    tpu.vector_store %arg8[%c0_32, %c0_33], %56 {strides = array<i32>} : memref<8x2xf32, #tpu.memory_space<vmem>>, vector<8x2xf32>,
    return
  }
  func.func @transform_0(%arg0: i32) -> (i32, i32) {
    %c0_i32 = arith.constant 0 : i32
    %c0_i32_0 = arith.constant 0 : i32
    return %arg0, %c0_i32 : i32, i32
  }
  func.func @transform_1(%arg0: i32) -> (i32, i32) {
    %c0_i32 = arith.constant 0 : i32
    %c0_i32_0 = arith.constant 0 : i32
    return %arg0, %c0_i32 : i32, i32
  }
  func.func @transform_2(%arg0: i32) -> (i32, i32) {
    %c0_i32 = arith.constant 0 : i32
    %c0_i32_0 = arith.constant 0 : i32
    %c0_i32_1 = arith.constant 0 : i32
    return %c0_i32, %c0_i32_0 : i32, i32
  }
  func.func @transform_3(%arg0: i32) -> (i32, i32) {
    %c0_i32 = arith.constant 0 : i32
    %c0_i32_0 = arith.constant 0 : i32
    %c0_i32_1 = arith.constant 0 : i32
    return %c0_i32, %c0_i32_0 : i32, i32
  }
  func.func @transform_4(%arg0: i32) -> (i32, i32, i32) {
    %c0_i32 = arith.constant 0 : i32
    %c0_i32_0 = arith.constant 0 : i32
    %c0_i32_1 = arith.constant 0 : i32
    %c0_i32_2 = arith.constant 0 : i32
    return %c0_i32, %c0_i32_0, %c0_i32_1 : i32, i32, i32
  }
  func.func @transform_5(%arg0: i32) -> (i32, i32) {
    %c0_i32 = arith.constant 0 : i32
    %c0_i32_0 = arith.constant 0 : i32
    %c0_i32_1 = arith.constant 0 : i32
    return %c0_i32, %c0_i32_0 : i32, i32
  }
  func.func @transform_6(%arg0: i32) -> (i32, i32) {
    %c0_i32 = arith.constant 0 : i32
    %c0_i32_0 = arith.constant 0 : i32
    %c0_i32_1 = arith.constant 0 : i32
    return %c0_i32, %c0_i32_0 : i32, i32
  }
  func.func @transform_7(%arg0: i32) -> (i32, i32) {
    %c0_i32 = arith.constant 0 : i32
    %c0_i32_0 = arith.constant 0 : i32
    return %arg0, %c0_i32 : i32, i32
  }
}

</mosaic_0001>

<bundles_post_ra>
// kernel: critic_forward.1
= control target key start
LH: loop header
LB: loop body
LE: loop exit
PB: predicated region body
PF: predicated region fallthrough
CT: control target
= control target key end

     0   :  { %12 = vsyncpa [#allocation4], 0  ;;  %s4050_s0 = inlined_call_operand.hbm [shape: f32[8,16], index: 0, kind: input, shape index: {}]   ;;  %s4051_s1 = inlined_call_operand.hbm [shape: f32[8,8], index: 1, kind: input, shape index: {}]   ;;  %s4052_s2 = inlined_call_operand.hbm [shape: bf16[128,1792], index: 2, kind: input, shape index: {}]   ;;  %s4053_s3 = inlined_call_operand.hbm [shape: f32[1,1792], index: 3, kind: input, shape index: {}]   ;;  %s4054_s4 = inlined_call_operand.hbm [shape: bf16[2,512,384], index: 4, kind: input, shape index: {}]   ;;  %s4055_s5 = inlined_call_operand.vmem [shape: f32[2,384], index: 5, kind: input, shape index: {}]   ;;  %s4056_s6 = inlined_call_operand.vmem [shape: f32[1,2], index: 6, kind: input, shape index: {}]   ;;  %s4057_s7 = inlined_call_operand.vmem [shape: f32[8,2], index: 7, kind: output, shape index: {}]  }
   0x1   :  { %13 = vsyncpa [#allocation6], 0 }
   0x2   :  { %14 = vsyncpa [#allocation9], 0  ;;  %s3808_s24 = smov [#allocation5]   ;;  %s3809_s26 = smov [#allocation8]  }
   0x3   :  { %s31_s25 = sshll.u32 %s3808_s24, 4  ;;  %s53_s27 = sshll.u32 %s3809_s26, 4  ;;  %s32_s25 = int_to_ptr.vmem [resolvable:$true] %s31_s25  ;;  %s54_s27 = int_to_ptr.vmem [resolvable:$true] %s53_s27 }
   0x4   :  { %s3692_s30 = scalar_lea.hbm %s4051_s1, 128 }
   0x5   :  { %p3693_p0 = scmp.ne.s32.totalorder %s4051_s1, %s3692_s30  ;;  %p3696_p1 = scmp.lt.u32.totalorder %s3692_s30, %s4051_s1 }
   0x7   :  { %p3698_p2 = pnand %p3696_p1, %p3693_p0 }
   0x9   :  { %3701 = shalt.err (!%p3698_p2)
}
   0xa   :  { %s3702_s12 = scalar_lea.vmem %s32_s25, 128  ;;  %p3707_p4 = scmp.lt.s32.totalorder %s32_s25, %s32_s25 }
   0xb   :  { %p3703_p3 = scmp.ne.s32.totalorder %s32_s25, %s3702_s12  ;;  %p3708_p5 = scmp.lt.s32.totalorder %s3702_s12, %s3702_s12 }
   0xd   :  { %p3709_p6 = por %p3708_p5, %p3707_p4 }
   0xf   :  { %p3710_p7 = pnand %p3709_p6, %p3703_p3 }
  0x11   :  { %3713 = shalt.err (!%p3710_p7)
}
  0x12   :  { %34 = dma.hbm_to_vmem [thread:$0]  %s4051_s1, 128, %s32_s25, [#allocation6]  }
  0x13   :  { %s3714_s17 = scalar_lea.hbm %s4053_s3, 224 }
  0x14   :  { %p3715_p8 = scmp.ne.s32.totalorder %s4053_s3, %s3714_s17  ;;  %p3718_p9 = scmp.lt.u32.totalorder %s3714_s17, %s4053_s3 }
  0x16   :  { %p3720_p10 = pnand %p3718_p9, %p3715_p8 }
  0x18   :  { %3723 = shalt.err (!%p3720_p10)
}
  0x19   :  { %s3724_s22 = scalar_lea.vmem %s54_s27, 224  ;;  %p3729_p12 = scmp.lt.s32.totalorder %s54_s27, %s54_s27 }
  0x1a   :  { %p3725_p11 = scmp.ne.s32.totalorder %s54_s27, %s3724_s22  ;;  %p3730_p13 = scmp.lt.s32.totalorder %s3724_s22, %s3724_s22 }
  0x1c   :  { %p3731_p0 = por %p3730_p13, %p3729_p12 }
  0x1e   :  { %p3732_p1 = pnand %p3731_p0, %p3725_p11 }
  0x20   :  { %3735 = shalt.err (!%p3732_p1)
}
  0x21   :  { %56 = dma.hbm_to_vmem [thread:$0]  %s4053_s3, 224, %s54_s27, [#allocation9]  }
  0x22   :  { %s3810_s24 = smov [#allocation3]   ;;  %s3811_s26 = smov [#allocation7]  }
  0x23   :  { %s21_s25 = sshll.u32 %s3810_s24, 4  ;;  %s40_s28 = sshll.u32 %s3811_s26, 4  ;;  %s22_s25 = int_to_ptr.vmem [resolvable:$true] %s21_s25  ;;  %s3884_s28 = int_to_ptr.vmem [resolvable:$true] %s40_s28 }
  0x24   :  { %s3736_s8 = scalar_lea.hbm %s4050_s0, 128 }
  0x25   :  { %p3737_p2 = scmp.ne.s32.totalorder %s4050_s0, %s3736_s8  ;;  %p3740_p3 = scmp.lt.u32.totalorder %s3736_s8, %s4050_s0 }
  0x27   :  { %p3742_p4 = pnand %p3740_p3, %p3737_p2 }
  0x29   :  { %3745 = shalt.err (!%p3742_p4)
}
  0x2a   :  { %s3746_s3 = scalar_lea.vmem %s22_s25, 128  ;;  %p3751_p6 = scmp.lt.s32.totalorder %s22_s25, %s22_s25 }
  0x2b   :  { %p3747_p5 = scmp.ne.s32.totalorder %s22_s25, %s3746_s3  ;;  %p3752_p7 = scmp.lt.s32.totalorder %s3746_s3, %s3746_s3 }
  0x2d   :  { %p3753_p8 = por %p3752_p7, %p3751_p6 }
  0x2f   :  { %p3754_p9 = pnand %p3753_p8, %p3747_p5 }
  0x31   :  { %3757 = shalt.err (!%p3754_p9)
}
  0x32   :  { %24 = dma.hbm_to_vmem [thread:$0]  %s4050_s0, 128, %s22_s25, [#allocation4]  }
  0x33   :  { %s3758_s16 = scalar_lea.hbm %s4052_s2, 14336 }
  0x34   :  { %p3759_p10 = scmp.ne.s32.totalorder %s4052_s2, %s3758_s16  ;;  %p3762_p11 = scmp.lt.u32.totalorder %s3758_s16, %s4052_s2 }
  0x36   :  { %p3764_p12 = pnand %p3762_p11, %p3759_p10 }
  0x38   :  { %3767 = shalt.err (!%p3764_p12)
}
  0x39   :  { %s3768_s21 = scalar_lea.vmem %s3884_s28, 14336  ;;  %p3773_p0 = scmp.lt.s32.totalorder %s3884_s28, %s3884_s28 }
  0x3a   :  { %p3769_p13 = scmp.ne.s32.totalorder %s3884_s28, %s3768_s21  ;;  %p3774_p1 = scmp.lt.s32.totalorder %s3768_s21, %s3768_s21 }
  0x3c   :  { %p3775_p2 = por %p3774_p1, %p3773_p0 }
  0x3e   :  { %p3776_p3 = pnand %p3775_p2, %p3769_p13 }
  0x40   :  { %3779 = shalt.err (!%p3776_p3)
}
  0x41   :  { %s3812_s0 = smov 896   ;;  %s3813_s22 = smov 56  }
  0x42   :  { %46 = dma.hbm_to_vmem [thread:$0]  %s4052_s2, 14336, %s3884_s28, [#allocation6], %s3812_s0, %s3812_s0, %s3813_s22  }
  0x43   :  { %s3814_s24 = smov [#allocation10]   ;;  %s3780_s30 = scalar_lea.hbm %s4054_s4, 24576 }
  0x44   :  { %s62_s25 = sshll.u32 %s3814_s24, 4  ;;  %p3781_p4 = scmp.ne.s32.totalorder %s4054_s4, %s3780_s30  ;;  %s63_s25 = int_to_ptr.vmem [resolvable:$true] %s62_s25 }
  0x45   :  { %p3784_p5 = scmp.lt.u32.totalorder %s3780_s30, %s4054_s4 }
  0x47   :  { %p3786_p6 = pnand %p3784_p5, %p3781_p4 }
  0x49   :  { %3789 = shalt.err (!%p3786_p6)
}
  0x4a   :  { %s3790_s12 = scalar_lea.vmem %s63_s25, 24576  ;;  %p3795_p8 = scmp.lt.s32.totalorder %s63_s25, %s63_s25 }
  0x4b   :  { %p3791_p7 = scmp.ne.s32.totalorder %s63_s25, %s3790_s12  ;;  %p3796_p9 = scmp.lt.s32.totalorder %s3790_s12, %s3790_s12 }
  0x4d   :  { %p3797_p10 = por %p3796_p9, %p3795_p8 }
  0x4f   :  { %p3798_p11 = pnand %p3797_p10, %p3791_p7 }
  0x51   :  { %3801 = shalt.err (!%p3798_p11)
}
  0x52   :  { %s3815_s2 = smov 192   ;;  %s3816_s28 = smov 12  }
  0x53   :  { %68 = dma.hbm_to_vmem [thread:$0]  %s4054_s4, 24576, %s63_s25, [#allocation9], %s3815_s2, %s3815_s2, %s3816_s28  }
  0x54   :  { %3802 = dma.done.wait [#allocation4], 128  }
  0x55   :  { %3803 = vsyncadd [#allocation4], 4294967168 }
  0x56   :  { %3804 = dma.done.wait [#allocation6], 14464  }
  0x57   :  { %3805 = vsyncadd [#allocation6], 4294952832 }
  0x58   :  { %3806 = dma.done.wait [#allocation9], 24800  }
  0x59   :  { %3807 = vsyncadd [#allocation9], 4294942496  ;;  %v3817_v0 = vmov 0.0   ;;  %v3818_v1 = vmov 0   ;;  %v93_v2 = vld [vmem:[#allocation5] sm:$0xff]  ;;  %s3819_s13 = smov 16  }
  0x5a   :  { %89 = vst [vmem:[#allocation2] sm:$0xff] %v3817_v0  ;;  %880 = vmatprep.mubr.bf16.mxu0 %v3818_v1  ;;  %921 = vmatprep.mubr.bf16.mxu1 %v3818_v1  ;;  %v3268_v3 = vld [vmem:[#allocation7 + $0x4] ss:$56 sps:$4 sm:$0xff]   ;;  %v3272_v5 = vld [vmem:[#allocation7] ss:$56 sps:$4 sm:$0xff]   ;;  %vm91_vm0 = vcmask 130048  }
  0x5b   :  { %95 = vrot.lane.b32.xlu0 %v93_v2, %s3819_s13  ;;  %v3270_v4 = vld [vmem:[#allocation7 + $0xc] ss:$56 sps:$4 sm:$0xff]   ;;  %v3273_v6 = vld [vmem:[#allocation7 + $0x8] ss:$56 sps:$4 sm:$0xff]   ;;  %848 = vmatprep.subr.bf16.mxu0 %v3268_v3  ;;  %v3276_v8 = vld [vmem:[#allocation7 + $0x7c] ss:$56 sps:$4 sm:$0xff]  }
  0x5c   :  { %v3274_v7 = vld [vmem:[#allocation7 + $0x74] ss:$56 sps:$4 sm:$0xff]   ;;  %889 = vmatprep.subr.bf16.mxu1 %v3270_v4  ;;  %849 = vmatpush1.bf16.msra.mxu0 %v3272_v5  ;;  %v3278_v9 = vld [vmem:[#allocation7 + $0x70] ss:$56 sps:$4 sm:$0xff]   ;;  %v3280_v11 = vld [vmem:[#allocation7 + $0xe4] ss:$56 sps:$4 sm:$0xff]  }
  0x5d   :  { %890 = vmatpush1.bf16.msra.mxu1 %v3273_v6  ;;  %850 = vmatprep.subr.bf16.mxu0 %v3274_v7  ;;  %v3279_v10 = vld [vmem:[#allocation7 + $0x78] ss:$56 sps:$4 sm:$0xff]   ;;  %v3282_v12 = vld [vmem:[#allocation7 + $0xec] ss:$56 sps:$4 sm:$0xff]   ;;  %v3285_v14 = vld [vmem:[#allocation7 + $0xe8] ss:$56 sps:$4 sm:$0xff]  }
  0x5e   :  { %891 = vmatprep.subr.bf16.mxu1 %v3276_v8  ;;  %v3284_v13 = vld [vmem:[#allocation7 + $0xe0] ss:$56 sps:$4 sm:$0xff]   ;;  %v3286_v15 = vld [vmem:[#allocation7 + $0x154] ss:$56 sps:$4 sm:$0xff]   ;;  %v3290_v17 = vld [vmem:[#allocation7 + $0x150] ss:$56 sps:$4 sm:$0xff]  }
  0x5f   :  { %v3288_v16 = vld [vmem:[#allocation7 + $0x15c] ss:$56 sps:$4 sm:$0xff]   ;;  %v3291_v18 = vld [vmem:[#allocation7 + $0x158] ss:$56 sps:$4 sm:$0xff]   ;;  %v3294_v20 = vld [vmem:[#allocation7 + $0x1cc] ss:$56 sps:$4 sm:$0xff]  }
  0x60   :  { %851 = vmatpush1.bf16.msra.mxu0 %v3278_v9  ;;  %v3292_v19 = vld [vmem:[#allocation7 + $0x1c4] ss:$56 sps:$4 sm:$0xff]   ;;  %v3296_v21 = vld [vmem:[#allocation7 + $0x1c0] ss:$56 sps:$4 sm:$0xff]   ;;  %v90_v23 = vld [vmem:[#allocation3] sm:$0xff]  ;;  %vm98_vm1 = vcmask 195712  }
  0x61   :  { %892 = vmatpush1.bf16.msra.mxu1 %v3279_v10  ;;  %852 = vmatprep.subr.bf16.mxu0 %v3280_v11  ;;  %v3297_v22 = vld [vmem:[#allocation7 + $0x1c8] ss:$56 sps:$4 sm:$0xff]   ;;  %v3298_v24 = vld [vmem:[#allocation7 + $0x234] ss:$56 sps:$4 sm:$0xff]   ;;  %92 = vst.msk [vmem:[#allocation2] sm:$0xff] %vm91_vm0, %v90_v23  ;;  %vm2844_vm3 = vcmask 15360  }
  0x62   :  { %893 = vmatprep.subr.bf16.mxu1 %v3282_v12  ;;  %v3300_v25 = vld [vmem:[#allocation7 + $0x23c] ss:$56 sps:$4 sm:$0xff]   ;;  %v3302_v26 = vld [vmem:[#allocation7 + $0x230] ss:$56 sps:$4 sm:$0xff]   ;;  %v3306_v29 = vld [vmem:[#allocation7 + $0x2ac] ss:$56 sps:$4 sm:$0xff]  }
  0x63   :  { %v3303_v27 = vld [vmem:[#allocation7 + $0x238] ss:$56 sps:$4 sm:$0xff]   ;;  %v3304_v28 = vld [vmem:[#allocation7 + $0x2a4] ss:$56 sps:$4 sm:$0xff]   ;;  %v3309_v31 = vld [vmem:[#allocation7 + $0x2a8] ss:$56 sps:$4 sm:$0xff]  }
  0x64   :  { %853 = vmatpush1.bf16.msra.mxu0 %v3284_v13  ;;  %v3308_v30 = vld [vmem:[#allocation7 + $0x2a0] ss:$56 sps:$4 sm:$0xff]   ;;  %v3310_v32 = vld [vmem:[#allocation7 + $0x314] ss:$56 sps:$4 sm:$0xff]   ;;  %v3314_v34 = vld [vmem:[#allocation7 + $0x310] ss:$56 sps:$4 sm:$0xff]  }
  0x65   :  { %894 = vmatpush1.bf16.msra.mxu1 %v3285_v14  ;;  %854 = vmatprep.subr.bf16.mxu0 %v3286_v15  ;;  %v3312_v33 = vld [vmem:[#allocation7 + $0x31c] ss:$56 sps:$4 sm:$0xff]   ;;  %v3315_v35 = vld [vmem:[#allocation7 + $0x318] ss:$56 sps:$4 sm:$0xff]   ;;  %v3327_v44 = vld [vmem:[#allocation7 + $0x8c] ss:$56 sps:$4 sm:$0xff]  }
  0x66   :  { %895 = vmatprep.subr.bf16.mxu1 %v3288_v16  ;;  %v3318_v36 = vld [vmem:[#allocation7 + $0x14] ss:$56 sps:$4 sm:$0xff]   ;;  %v3316_v39 = vld [vmem:[#allocation7 + $0x10] ss:$56 sps:$4 sm:$0xff]   ;;  %v3324_v42 = vld [vmem:[#allocation7 + $0x84] ss:$56 sps:$4 sm:$0xff]  }
  0x67   :  { %v3321_v37 = vld [vmem:[#allocation7 + $0x1c] ss:$56 sps:$4 sm:$0xff]   ;;  %v3319_v40 = vld [vmem:[#allocation7 + $0x18] ss:$56 sps:$4 sm:$0xff]   ;;  %v3325_v46 = vld [vmem:[#allocation7 + $0x88] ss:$56 sps:$4 sm:$0xff]  }
  0x68   :  { %855 = vmatpush1.bf16.msra.mxu0 %v3290_v17  ;;  %v3322_v45 = vld [vmem:[#allocation7 + $0x80] ss:$56 sps:$4 sm:$0xff]   ;;  %v3330_v47 = vld [vmem:[#allocation7 + $0xf4] ss:$56 sps:$4 sm:$0xff]   ;;  %v3328_v49 = vld [vmem:[#allocation7 + $0xf0] ss:$56 sps:$4 sm:$0xff]  }
  0x69   :  { %896 = vmatpush1.bf16.msra.mxu1 %v3291_v18  ;;  %856 = vmatprep.subr.bf16.mxu0 %v3292_v19  ;;  %v3333_v48 = vld [vmem:[#allocation7 + $0xfc] ss:$56 sps:$4 sm:$0xff]   ;;  %v3331_v50 = vld [vmem:[#allocation7 + $0xf8] ss:$56 sps:$4 sm:$0xff]   ;;  %v3339_v52 = vld [vmem:[#allocation7 + $0x16c] ss:$56 sps:$4 sm:$0xff]  }
  0x6a   :  { %897 = vmatprep.subr.bf16.mxu1 %v3294_v20  ;;  %v3336_v51 = vld [vmem:[#allocation7 + $0x164] ss:$56 sps:$4 sm:$0xff]   ;;  %v3334_v53 = vld [vmem:[#allocation7 + $0x160] ss:$56 sps:$4 sm:$0xff]   ;;  %v3342_v55 = vld [vmem:[#allocation7 + $0x1d4] ss:$56 sps:$4 sm:$0xff]  }
  0x6b   :  { %v3337_v54 = vld [vmem:[#allocation7 + $0x168] ss:$56 sps:$4 sm:$0xff]   ;;  %v3345_v56 = vld [vmem:[#allocation7 + $0x1dc] ss:$56 sps:$4 sm:$0xff]   ;;  %v3343_v58 = vld [vmem:[#allocation7 + $0x1d8] ss:$56 sps:$4 sm:$0xff]  }
  0x6c   :  { %857 = vmatpush1.bf16.msra.mxu0 %v3296_v21  ;;  %v3340_v57 = vld [vmem:[#allocation7 + $0x1d0] ss:$56 sps:$4 sm:$0xff]   ;;  %v3348_v59 = vld [vmem:[#allocation7 + $0x244] ss:$56 sps:$4 sm:$0xff]   ;;  %v3346_v61 = vld [vmem:[#allocation7 + $0x240] ss:$56 sps:$4 sm:$0xff]  }
  0x6d   :  { %898 = vmatpush1.bf16.msra.mxu1 %v3297_v22  ;;  %858 = vmatprep.subr.bf16.mxu0 %v3298_v24  ;;  %v3351_v60 = vld [vmem:[#allocation7 + $0x24c] ss:$56 sps:$4 sm:$0xff]   ;;  %v3349_v62 = vld [vmem:[#allocation7 + $0x248] ss:$56 sps:$4 sm:$0xff]   ;;  %v3357_v0 = vld [vmem:[#allocation7 + $0x2bc] ss:$56 sps:$4 sm:$0xff]  }
  0x6e   :  { %899 = vmatprep.subr.bf16.mxu1 %v3300_v25  ;;  %v3354_v63 = vld [vmem:[#allocation7 + $0x2b4] ss:$56 sps:$4 sm:$0xff]   ;;  %v3352_v2 = vld [vmem:[#allocation7 + $0x2b0] ss:$56 sps:$4 sm:$0xff]   ;;  %v3360_v4 = vld [vmem:[#allocation7 + $0x324] ss:$56 sps:$4 sm:$0xff]  }
  0x6f   :  { %v3355_v3 = vld [vmem:[#allocation7 + $0x2b8] ss:$56 sps:$4 sm:$0xff]   ;;  %v3363_v5 = vld [vmem:[#allocation7 + $0x32c] ss:$56 sps:$4 sm:$0xff]   ;;  %v3361_v7 = vld [vmem:[#allocation7 + $0x328] ss:$56 sps:$4 sm:$0xff]  }
  0x70   :  { %859 = vmatpush1.bf16.msra.mxu0 %v3302_v26  ;;  %v3358_v6 = vld [vmem:[#allocation7 + $0x320] ss:$56 sps:$4 sm:$0xff]   ;;  %v3366_v8 = vld [vmem:[#allocation7 + $0x24] ss:$56 sps:$4 sm:$0xff]   ;;  %v3372_v12 = vld [vmem:[#allocation7 + $0x94] ss:$56 sps:$4 sm:$0xff]  }
  0x71   :  { %900 = vmatpush1.bf16.msra.mxu1 %v3303_v27  ;;  %860 = vmatprep.subr.bf16.mxu0 %v3304_v28  ;;  %v3369_v9 = vld [vmem:[#allocation7 + $0x2c] ss:$56 sps:$4 sm:$0xff]   ;;  %v3364_v10 = vld [vmem:[#allocation7 + $0x20] ss:$56 sps:$4 sm:$0xff]   ;;  %v3375_v13 = vld [vmem:[#allocation7 + $0x9c] ss:$56 sps:$4 sm:$0xff]  }
  0x72   :  { %901 = vmatprep.subr.bf16.mxu1 %v3306_v29  ;;  %v3367_v11 = vld [vmem:[#allocation7 + $0x28] ss:$56 sps:$4 sm:$0xff]   ;;  %v3373_v15 = vld [vmem:[#allocation7 + $0x98] ss:$56 sps:$4 sm:$0xff]   ;;  %v3378_v16 = vld [vmem:[#allocation7 + $0x104] ss:$56 sps:$4 sm:$0xff]  }
  0x73   :  { %v3370_v14 = vld [vmem:[#allocation7 + $0x90] ss:$56 sps:$4 sm:$0xff]   ;;  %v3381_v17 = vld [vmem:[#allocation7 + $0x10c] ss:$56 sps:$4 sm:$0xff]   ;;  %v3376_v18 = vld [vmem:[#allocation7 + $0x100] ss:$56 sps:$4 sm:$0xff]  }
  0x74   :  { %861 = vmatpush1.bf16.msra.mxu0 %v3308_v30  ;;  %v3379_v19 = vld [vmem:[#allocation7 + $0x108] ss:$56 sps:$4 sm:$0xff]   ;;  %v3384_v20 = vld [vmem:[#allocation7 + $0x174] ss:$56 sps:$4 sm:$0xff]   ;;  %v3385_v23 = vld [vmem:[#allocation7 + $0x178] ss:$56 sps:$4 sm:$0xff]  }
  0x75   :  { %902 = vmatpush1.bf16.msra.mxu1 %v3309_v31  ;;  %862 = vmatprep.subr.bf16.mxu0 %v3310_v32  ;;  %v3387_v21 = vld [vmem:[#allocation7 + $0x17c] ss:$56 sps:$4 sm:$0xff]   ;;  %v3382_v22 = vld [vmem:[#allocation7 + $0x170] ss:$56 sps:$4 sm:$0xff]   ;;  %v3393_v25 = vld [vmem:[#allocation7 + $0x1ec] ss:$56 sps:$4 sm:$0xff]  }
  0x76   :  { %903 = vmatprep.subr.bf16.mxu1 %v3312_v33  ;;  %v3390_v24 = vld [vmem:[#allocation7 + $0x1e4] ss:$56 sps:$4 sm:$0xff]   ;;  %v3388_v26 = vld [vmem:[#allocation7 + $0x1e0] ss:$56 sps:$4 sm:$0xff]   ;;  %v3396_v28 = vld [vmem:[#allocation7 + $0x254] ss:$56 sps:$4 sm:$0xff]  }
  0x77   :  { %v3391_v27 = vld [vmem:[#allocation7 + $0x1e8] ss:$56 sps:$4 sm:$0xff]   ;;  %v3399_v29 = vld [vmem:[#allocation7 + $0x25c] ss:$56 sps:$4 sm:$0xff]   ;;  %v3397_v31 = vld [vmem:[#allocation7 + $0x258] ss:$56 sps:$4 sm:$0xff]  }
  0x78   :  { %863 = vmatpush1.bf16.msra.mxu0 %v3314_v34  ;;  %v3394_v30 = vld [vmem:[#allocation7 + $0x250] ss:$56 sps:$4 sm:$0xff]   ;;  %v3402_v32 = vld [vmem:[#allocation7 + $0x2c4] ss:$56 sps:$4 sm:$0xff]   ;;  %v3400_v34 = vld [vmem:[#allocation7 + $0x2c0] ss:$56 sps:$4 sm:$0xff]  }
  0x79   :  { %904 = vmatpush1.bf16.msra.mxu1 %v3315_v35  ;;  %930 = vmatprep.subr.bf16.mxu0 %v3318_v36  ;;  %v3405_v33 = vld [vmem:[#allocation7 + $0x2cc] ss:$56 sps:$4 sm:$0xff]   ;;  %v3403_v35 = vld [vmem:[#allocation7 + $0x2c8] ss:$56 sps:$4 sm:$0xff]  }
  0x7a   :  { %971 = vmatprep.subr.bf16.mxu1 %v3321_v37  ;;  %v3408_v36 = vld [vmem:[#allocation7 + $0x334] ss:$56 sps:$4 sm:$0xff]  }
  0x7b   :  { %v3411_v37 = vld [vmem:[#allocation7 + $0x33c] ss:$56 sps:$4 sm:$0xff]  }
  0xcd   :  { %v96_v38 = vpop.permute.xlu0 %95 }
  0xce   :  { %99 = vst.msk [vmem:[#allocation2] sm:$0xff] %vm98_vm1, %v96_v38  ;;  %v3406_v38 = vld [vmem:[#allocation7 + $0x330] ss:$56 sps:$4 sm:$0xff]  }
  0xd5   :  { %v100_v41 = vld [vmem:[#allocation2] sm:$0xff] }
  0xd6   :  { %v3929_v43 = vpack.c.bf16 %v100_v41, %v100_v41  ;;  %v3463_v41 = vld [vmem:[#allocation10 + $0xc8] ss:$12 sps:$4 sm:$0xff]  }
  0xd8   :  { %881 = vmatmul.mubr.bf16.vlgmr.msra.gmra.mrb[0].mxu0 %v3929_v43  ;;  %922 = vmatmul.mubr.bf16.vlgmr.msra.gmra.mrb[0].mxu1 %v3929_v43 }
  0xd9   :  { %931 = vmatpush1.bf16.msra.mxu0 %v3316_v39  ;;  %972 = vmatpush1.bf16.msra.mxu1 %v3319_v40  ;;  %v3409_v39 = vld [vmem:[#allocation7 + $0x338] ss:$56 sps:$4 sm:$0xff]   ;;  %v3414_v40 = vld [vmem:[#allocation7 + $0x34] ss:$56 sps:$4 sm:$0xff]  }
  0xda   :  { %932 = vmatprep.subr.bf16.mxu0 %v3324_v42  ;;  %973 = vmatprep.subr.bf16.mxu1 %v3327_v44  ;;  %v3412_v42 = vld [vmem:[#allocation7 + $0x30] ss:$56 sps:$4 sm:$0xff]   ;;  %v3417_v44 = vld [vmem:[#allocation7 + $0xa4] ss:$56 sps:$4 sm:$0xff]  }
  0xdb   :  { %962 = vmatprep.mubr.bf16.mxu0 %v3818_v1  ;;  %1003 = vmatprep.mubr.bf16.mxu1 %v3818_v1 }
  0xdd   :  { %933 = vmatpush1.bf16.msra.mxu0 %v3322_v45  ;;  %974 = vmatpush1.bf16.msra.mxu1 %v3325_v46  ;;  %v3464_v45 = vld [vmem:[#allocation10 + $0x8] ss:$12 sps:$4 sm:$0xff]   ;;  %v3468_v46 = vld [vmem:[#allocation10 + $0xe0] ss:$12 sps:$4 sm:$0xff]  }
  0xde   :  { %934 = vmatprep.subr.bf16.mxu0 %v3330_v47  ;;  %975 = vmatprep.subr.bf16.mxu1 %v3333_v48  ;;  %v3415_v47 = vld [vmem:[#allocation7 + $0xa0] ss:$56 sps:$4 sm:$0xff]   ;;  %v3420_v48 = vld [vmem:[#allocation7 + $0x114] ss:$56 sps:$4 sm:$0xff]  }
  0xe1   :  { %935 = vmatpush1.bf16.msra.mxu0 %v3328_v49  ;;  %976 = vmatpush1.bf16.msra.mxu1 %v3331_v50  ;;  %v3469_v49 = vld [vmem:[#allocation10 + $0x20] ss:$12 sps:$4 sm:$0xff]   ;;  %v3473_v50 = vld [vmem:[#allocation10 + $0xf8] ss:$12 sps:$4 sm:$0xff]  }
  0xe2   :  { %936 = vmatprep.subr.bf16.mxu0 %v3336_v51  ;;  %977 = vmatprep.subr.bf16.mxu1 %v3339_v52  ;;  %v3418_v51 = vld [vmem:[#allocation7 + $0x110] ss:$56 sps:$4 sm:$0xff]   ;;  %v3423_v52 = vld [vmem:[#allocation7 + $0x184] ss:$56 sps:$4 sm:$0xff]  }
  0xe5   :  { %937 = vmatpush1.bf16.msra.mxu0 %v3334_v53  ;;  %978 = vmatpush1.bf16.msra.mxu1 %v3337_v54  ;;  %v3474_v53 = vld [vmem:[#allocation10 + $0x38] ss:$12 sps:$4 sm:$0xff]   ;;  %v3478_v54 = vld [vmem:[#allocation10 + $0x110] ss:$12 sps:$4 sm:$0xff]  }
  0xe6   :  { %938 = vmatprep.subr.bf16.mxu0 %v3342_v55  ;;  %979 = vmatprep.subr.bf16.mxu1 %v3345_v56  ;;  %v3421_v55 = vld [vmem:[#allocation7 + $0x180] ss:$56 sps:$4 sm:$0xff]   ;;  %v3426_v56 = vld [vmem:[#allocation7 + $0x1f4] ss:$56 sps:$4 sm:$0xff]  }
  0xe9   :  { %939 = vmatpush1.bf16.msra.mxu0 %v3340_v57  ;;  %980 = vmatpush1.bf16.msra.mxu1 %v3343_v58  ;;  %v3483_v57 = vld [vmem:[#allocation10 + $0x128] ss:$12 sps:$4 sm:$0xff]   ;;  %v3424_v58 = vld [vmem:[#allocation7 + $0x1f0] ss:$56 sps:$4 sm:$0xff]  }
  0xea   :  { %940 = vmatprep.subr.bf16.mxu0 %v3348_v59  ;;  %981 = vmatprep.subr.bf16.mxu1 %v3351_v60  ;;  %v3429_v59 = vld [vmem:[#allocation7 + $0x264] ss:$56 sps:$4 sm:$0xff]  }
  0xeb   :  { %v3484_v60 = vld [vmem:[#allocation10 + $0x68] ss:$12 sps:$4 sm:$0xff]  }
  0xed   :  { %941 = vmatpush1.bf16.msra.mxu0 %v3346_v61  ;;  %982 = vmatpush1.bf16.msra.mxu1 %v3349_v62  ;;  %v3488_v61 = vld [vmem:[#allocation10 + $0x140] ss:$12 sps:$4 sm:$0xff]  }
  0xee   :  { %942 = vmatprep.subr.bf16.mxu0 %v3354_v63  ;;  %983 = vmatprep.subr.bf16.mxu1 %v3357_v0  ;;  %v3427_v62 = vld [vmem:[#allocation7 + $0x260] ss:$56 sps:$4 sm:$0xff]   ;;  %v3432_v63 = vld [vmem:[#allocation7 + $0x2d4] ss:$56 sps:$4 sm:$0xff]  }
  0xef   :  { %v3489_v0 = vld [vmem:[#allocation10 + $0x80] ss:$12 sps:$4 sm:$0xff]  }
  0xf1   :  { %943 = vmatpush1.bf16.msra.mxu0 %v3352_v2  ;;  %984 = vmatpush1.bf16.msra.mxu1 %v3355_v3  ;;  %v3493_v2 = vld [vmem:[#allocation10 + $0x158] ss:$12 sps:$4 sm:$0xff]  }
  0xf2   :  { %944 = vmatprep.subr.bf16.mxu0 %v3360_v4  ;;  %985 = vmatprep.subr.bf16.mxu1 %v3363_v5  ;;  %v3430_v3 = vld [vmem:[#allocation7 + $0x2d0] ss:$56 sps:$4 sm:$0xff]   ;;  %v3435_v4 = vld [vmem:[#allocation7 + $0x344] ss:$56 sps:$4 sm:$0xff]  }
  0xf3   :  { %v3494_v5 = vld [vmem:[#allocation10 + $0x98] ss:$12 sps:$4 sm:$0xff]  }
  0xf5   :  { %945 = vmatpush1.bf16.msra.mxu0 %v3358_v6  ;;  %986 = vmatpush1.bf16.msra.mxu1 %v3361_v7  ;;  %v3498_v6 = vld [vmem:[#allocation10 + $0x170] ss:$12 sps:$4 sm:$0xff]  }
  0xf6   :  { %1012 = vmatprep.subr.bf16.mxu0 %v3366_v8  ;;  %1053 = vmatprep.subr.bf16.mxu1 %v3369_v9  ;;  %v3433_v7 = vld [vmem:[#allocation7 + $0x340] ss:$56 sps:$4 sm:$0xff]  }
  0xf7   :  { %v3438_v8 = vld [vmem:[#allocation10 + $0x4] ss:$12 sps:$4 sm:$0xff]  }
  0xf8   :  { %963 = vmatmul.mubr.bf16.vlgmr.msra.gmra.mrb[4].mxu0 %v3929_v43  ;;  %1004 = vmatmul.mubr.bf16.vlgmr.msra.gmra.mrb[4].mxu1 %v3929_v43  ;;  %v3499_v9 = vld [vmem:[#allocation10 + $0xb0] ss:$12 sps:$4 sm:$0xff]  }
  0xf9   :  { %1013 = vmatpush1.bf16.msra.mxu0 %v3364_v10  ;;  %1054 = vmatpush1.bf16.msra.mxu1 %v3367_v11  ;;  %v3503_v10 = vld [vmem:[#allocation10 + $0x248] ss:$12 sps:$4 sm:$0xff]   ;;  %v3436_v11 = vld [vmem:[#allocation10] ss:$12 sps:$4 sm:$0xff]  }
  0xfa   :  { %1014 = vmatprep.subr.bf16.mxu0 %v3372_v12  ;;  %1055 = vmatprep.subr.bf16.mxu1 %v3375_v13  ;;  %v3441_v12 = vld [vmem:[#allocation10 + $0x1c] ss:$12 sps:$4 sm:$0xff]   ;;  %v3439_v13 = vld [vmem:[#allocation10 + $0x18] ss:$12 sps:$4 sm:$0xff]  }
  0xfb   :  { %1044 = vmatprep.mubr.bf16.mxu0 %v3818_v1  ;;  %1085 = vmatprep.mubr.bf16.mxu1 %v3818_v1 }
  0xfd   :  { %1015 = vmatpush1.bf16.msra.mxu0 %v3370_v14  ;;  %1056 = vmatpush1.bf16.msra.mxu1 %v3373_v15  ;;  %v3444_v14 = vld [vmem:[#allocation10 + $0x34] ss:$12 sps:$4 sm:$0xff]   ;;  %v3442_v15 = vld [vmem:[#allocation10 + $0x30] ss:$12 sps:$4 sm:$0xff]  }
  0xfe   :  { %1016 = vmatprep.subr.bf16.mxu0 %v3378_v16  ;;  %1057 = vmatprep.subr.bf16.mxu1 %v3381_v17  ;;  %v3447_v16 = vld [vmem:[#allocation10 + $0x4c] ss:$12 sps:$4 sm:$0xff]   ;;  %v3445_v17 = vld [vmem:[#allocation10 + $0x48] ss:$12 sps:$4 sm:$0xff]  }
 0x101   :  { %1017 = vmatpush1.bf16.msra.mxu0 %v3376_v18  ;;  %1058 = vmatpush1.bf16.msra.mxu1 %v3379_v19  ;;  %v3450_v18 = vld [vmem:[#allocation10 + $0x64] ss:$12 sps:$4 sm:$0xff]   ;;  %v3448_v19 = vld [vmem:[#allocation10 + $0x60] ss:$12 sps:$4 sm:$0xff]  }
 0x102   :  { %1018 = vmatprep.subr.bf16.mxu0 %v3384_v20  ;;  %1059 = vmatprep.subr.bf16.mxu1 %v3387_v21  ;;  %v3453_v20 = vld [vmem:[#allocation10 + $0x7c] ss:$12 sps:$4 sm:$0xff]   ;;  %v3451_v21 = vld [vmem:[#allocation10 + $0x78] ss:$12 sps:$4 sm:$0xff]  }
 0x105   :  { %1019 = vmatpush1.bf16.msra.mxu0 %v3382_v22  ;;  %1060 = vmatpush1.bf16.msra.mxu1 %v3385_v23  ;;  %v3454_v22 = vld [vmem:[#allocation10 + $0x90] ss:$12 sps:$4 sm:$0xff]   ;;  %v3459_v23 = vld [vmem:[#allocation10 + $0xac] ss:$12 sps:$4 sm:$0xff]  }
 0x106   :  { %1020 = vmatprep.subr.bf16.mxu0 %v3390_v24  ;;  %1061 = vmatprep.subr.bf16.mxu1 %v3393_v25  ;;  %v3457_v24 = vld [vmem:[#allocation10 + $0xa8] ss:$12 sps:$4 sm:$0xff]   ;;  %v3462_v25 = vld [vmem:[#allocation10 + $0xc4] ss:$12 sps:$4 sm:$0xff]  }
 0x109   :  { %1021 = vmatpush1.bf16.msra.mxu0 %v3388_v26  ;;  %1062 = vmatpush1.bf16.msra.mxu1 %v3391_v27  ;;  %v3460_v26 = vld [vmem:[#allocation10 + $0xc0] ss:$12 sps:$4 sm:$0xff]   ;;  %v3467_v27 = vld [vmem:[#allocation10 + $0xdc] ss:$12 sps:$4 sm:$0xff]  }
 0x10a   :  { %1022 = vmatprep.subr.bf16.mxu0 %v3396_v28  ;;  %1063 = vmatprep.subr.bf16.mxu1 %v3399_v29  ;;  %v3465_v28 = vld [vmem:[#allocation10 + $0xd8] ss:$12 sps:$4 sm:$0xff]   ;;  %v3472_v29 = vld [vmem:[#allocation10 + $0xf4] ss:$12 sps:$4 sm:$0xff]  }
 0x10d   :  { %1023 = vmatpush1.bf16.msra.mxu0 %v3394_v30  ;;  %1064 = vmatpush1.bf16.msra.mxu1 %v3397_v31  ;;  %v3470_v30 = vld [vmem:[#allocation10 + $0xf0] ss:$12 sps:$4 sm:$0xff]   ;;  %v3477_v31 = vld [vmem:[#allocation10 + $0x10c] ss:$12 sps:$4 sm:$0xff]  }
 0x10e   :  { %1024 = vmatprep.subr.bf16.mxu0 %v3402_v32  ;;  %1065 = vmatprep.subr.bf16.mxu1 %v3405_v33  ;;  %v3475_v32 = vld [vmem:[#allocation10 + $0x108] ss:$12 sps:$4 sm:$0xff]   ;;  %v3482_v33 = vld [vmem:[#allocation10 + $0x124] ss:$12 sps:$4 sm:$0xff]  }
 0x111   :  { %1025 = vmatpush1.bf16.msra.mxu0 %v3400_v34  ;;  %1066 = vmatpush1.bf16.msra.mxu1 %v3403_v35  ;;  %v3480_v34 = vld [vmem:[#allocation10 + $0x120] ss:$12 sps:$4 sm:$0xff]   ;;  %v3487_v35 = vld [vmem:[#allocation10 + $0x13c] ss:$12 sps:$4 sm:$0xff]  }
 0x112   :  { %1026 = vmatprep.subr.bf16.mxu0 %v3408_v36  ;;  %1067 = vmatprep.subr.bf16.mxu1 %v3411_v37  ;;  %v3485_v36 = vld [vmem:[#allocation10 + $0x138] ss:$12 sps:$4 sm:$0xff]   ;;  %v3492_v37 = vld [vmem:[#allocation10 + $0x154] ss:$12 sps:$4 sm:$0xff]  }
 0x115   :  { %1027 = vmatpush1.bf16.msra.mxu0 %v3406_v38  ;;  %1068 = vmatpush1.bf16.msra.mxu1 %v3409_v39  ;;  %v3490_v38 = vld [vmem:[#allocation10 + $0x150] ss:$12 sps:$4 sm:$0xff]   ;;  %v3497_v39 = vld [vmem:[#allocation10 + $0x16c] ss:$12 sps:$4 sm:$0xff]  }
 0x116   :  { %1094 = vmatprep.subr.bf16.mxu0 %v3414_v40  ;;  %3158 = vmatprep.subr.bf16.mxu1 %v3463_v41  ;;  %v3495_v40 = vld [vmem:[#allocation10 + $0x168] ss:$12 sps:$4 sm:$0xff]   ;;  %v3502_v41 = vld [vmem:[#allocation10 + $0x184] ss:$12 sps:$4 sm:$0xff]  }
 0x118   :  { %1045 = vmatmul.mubr.bf16.vlgmr.msra.gmra.mrb[8].mxu0 %v3929_v43  ;;  %1086 = vmatmul.mubr.bf16.vlgmr.msra.gmra.mrb[8].mxu1 %v3929_v43 }
 0x119   :  { %1095 = vmatpush1.bf16.msra.mxu0 %v3412_v42  ;;  %1126 = vmatprep.mubr.bf16.mxu0 %v3818_v1  ;;  %v3479_v1 = vld [vmem:[#allocation10 + $0x50] ss:$12 sps:$4 sm:$0xff]   ;;  %v218_v42 = vlaneseq }
 0x11a   :  { %1096 = vmatprep.subr.bf16.mxu0 %v3417_v44  ;;  %3159 = vmatpush3.bf16.msra.mxu1 %v3464_v45 }
 0x11b   :  { %3160 = vmatprep.subr.bf16.mxu1 %v3468_v46  ;;  %v3944_v44 = vshrl.u32 %v218_v42, 7  ;;  %v3949_v46 = vld [vmem:[#allocation8] sm:$0xff] }
 0x11d   :  { %1097 = vmatpush1.bf16.msra.mxu0 %v3415_v47  ;;  %v3947_v45 = vsub.s32 0, %v3944_v44  ;;  %v3952_v47 = vsub.s32 1, %v3944_v44 }
 0x11e   :  { %1098 = vmatprep.subr.bf16.mxu0 %v3420_v48  ;;  %3161 = vmatpush3.bf16.msra.mxu1 %v3469_v49  ;;  %v3955_v48 = vsub.s32 3, %v3944_v44 }
 0x11f   :  { %3162 = vmatprep.subr.bf16.mxu1 %v3473_v50  ;;  %v221_v49 = vrot.slane %v3949_v46, %v3947_v45  ;;  %v225_v50 = vrot.slane %v3949_v46, %v3952_v47 }
 0x121   :  { %1099 = vmatpush1.bf16.msra.mxu0 %v3418_v51  ;;  %v233_v51 = vrot.slane %v3949_v46, %v3955_v48 }
 0x122   :  { %1100 = vmatprep.subr.bf16.mxu0 %v3423_v52  ;;  %3163 = vmatpush3.bf16.msra.mxu1 %v3474_v53 }
 0x123   :  { %3164 = vmatprep.subr.bf16.mxu1 %v3478_v54 }
 0x125   :  { %1101 = vmatpush1.bf16.msra.mxu0 %v3421_v55 }
 0x126   :  { %1102 = vmatprep.subr.bf16.mxu0 %v3426_v56  ;;  %3165 = vmatpush3.bf16.msra.mxu1 %v3479_v1 }
 0x127   :  { %3166 = vmatprep.subr.bf16.mxu1 %v3483_v57 }
 0x129   :  { %1103 = vmatpush1.bf16.msra.mxu0 %v3424_v58 }
 0x12a   :  { %1104 = vmatprep.subr.bf16.mxu0 %v3429_v59  ;;  %3167 = vmatpush3.bf16.msra.mxu1 %v3484_v60 }
 0x12b   :  { %3168 = vmatprep.subr.bf16.mxu1 %v3488_v61 }
 0x12d   :  { %1105 = vmatpush1.bf16.msra.mxu0 %v3427_v62 }
 0x12e   :  { %1106 = vmatprep.subr.bf16.mxu0 %v3432_v63  ;;  %3169 = vmatpush3.bf16.msra.mxu1 %v3489_v0 }
 0x12f   :  { %3170 = vmatprep.subr.bf16.mxu1 %v3493_v2 }
 0x131   :  { %1107 = vmatpush1.bf16.msra.mxu0 %v3430_v3  ;;  %v3500_v3 = vld [vmem:[#allocation10 + $0x180] ss:$12 sps:$4 sm:$0xff]  }
 0x132   :  { %1108 = vmatprep.subr.bf16.mxu0 %v3435_v4  ;;  %3171 = vmatpush3.bf16.msra.mxu1 %v3494_v5  ;;  %v3504_v4 = vld [vmem:[#allocation10 + $0x188] ss:$12 sps:$4 sm:$0xff]  }
 0x133   :  { %3172 = vmatprep.subr.bf16.mxu1 %v3498_v6  ;;  %v3507_v6 = vld [vmem:[#allocation10 + $0x19c] ss:$12 sps:$4 sm:$0xff]  }
 0x135   :  { %1109 = vmatpush1.bf16.msra.mxu0 %v3433_v7  ;;  %v3508_v7 = vld [vmem:[#allocation10 + $0x260] ss:$12 sps:$4 sm:$0xff]  }
 0x136   :  { %1791 = vmatprep.subr.bf16.mxu0 %v3438_v8  ;;  %3173 = vmatpush3.bf16.msra.mxu1 %v3499_v9  ;;  %v3505_v9 = vld [vmem:[#allocation10 + $0x198] ss:$12 sps:$4 sm:$0xff]  }
 0x137   :  { %3180 = vmatprep.subr.bf16.mxu1 %v3503_v10  ;;  %v3509_v10 = vld [vmem:[#allocation10 + $0x1a0] ss:$12 sps:$4 sm:$0xff]  }
 0x138   :  { %1127 = vmatmul.mubr.bf16.vlgmr.msra.gmra.mrb[12].mxu0 %v3929_v43  ;;  %v3456_v43 = vld [vmem:[#allocation10 + $0x94] ss:$12 sps:$4 sm:$0xff]  }
 0x139   :  { %1792 = vmatpush1.bf16.msra.mxu0 %v3436_v11  ;;  %v3512_v11 = vld [vmem:[#allocation10 + $0x1b4] ss:$12 sps:$4 sm:$0xff]  }
 0x13a   :  { %1793 = vmatprep.subr.bf16.mxu0 %v3441_v12  ;;  %v3513_v12 = vld [vmem:[#allocation10 + $0x278] ss:$12 sps:$4 sm:$0xff]  }
 0x13d   :  { %1794 = vmatpush1.bf16.msra.mxu0 %v3439_v13  ;;  %v3510_v13 = vld [vmem:[#allocation10 + $0x1b0] ss:$12 sps:$4 sm:$0xff]  }
 0x13e   :  { %1795 = vmatprep.subr.bf16.mxu0 %v3444_v14  ;;  %v3514_v14 = vld [vmem:[#allocation10 + $0x1b8] ss:$12 sps:$4 sm:$0xff]  }
 0x141   :  { %1796 = vmatpush1.bf16.msra.mxu0 %v3442_v15  ;;  %v3517_v15 = vld [vmem:[#allocation10 + $0x1cc] ss:$12 sps:$4 sm:$0xff]  }
 0x142   :  { %1797 = vmatprep.subr.bf16.mxu0 %v3447_v16  ;;  %v3518_v16 = vld [vmem:[#allocation10 + $0x290] ss:$12 sps:$4 sm:$0xff]  }
 0x145   :  { %1798 = vmatpush1.bf16.msra.mxu0 %v3445_v17  ;;  %v3515_v17 = vld [vmem:[#allocation10 + $0x1c8] ss:$12 sps:$4 sm:$0xff]  }
 0x146   :  { %1799 = vmatprep.subr.bf16.mxu0 %v3450_v18  ;;  %v3519_v18 = vld [vmem:[#allocation10 + $0x1d0] ss:$12 sps:$4 sm:$0xff]  }
 0x149   :  { %1800 = vmatpush1.bf16.msra.mxu0 %v3448_v19  ;;  %v3522_v19 = vld [vmem:[#allocation10 + $0x1e4] ss:$12 sps:$4 sm:$0xff]  }
 0x14a   :  { %1801 = vmatprep.subr.bf16.mxu0 %v3453_v20  ;;  %v3523_v20 = vld [vmem:[#allocation10 + $0x2a8] ss:$12 sps:$4 sm:$0xff]  }
 0x14d   :  { %1802 = vmatpush1.bf16.msra.mxu0 %v3451_v21  ;;  %v3520_v21 = vld [vmem:[#allocation10 + $0x1e0] ss:$12 sps:$4 sm:$0xff]  }
 0x14e   :  { %1803 = vmatprep.subr.bf16.mxu0 %v3456_v43  ;;  %v3524_v43 = vld [vmem:[#allocation10 + $0x1e8] ss:$12 sps:$4 sm:$0xff]  }
 0x151   :  { %1804 = vmatpush1.bf16.msra.mxu0 %v3454_v22  ;;  %v3966_v22 = vsub.s32 2, %v3944_v44 }
 0x152   :  { %1805 = vmatprep.subr.bf16.mxu0 %v3459_v23  ;;  %v3527_v23 = vld [vmem:[#allocation10 + $0x1fc] ss:$12 sps:$4 sm:$0xff]  }
 0x155   :  { %1806 = vmatpush1.bf16.msra.mxu0 %v3457_v24  ;;  %v3528_v24 = vld [vmem:[#allocation10 + $0x2c0] ss:$12 sps:$4 sm:$0xff]  }
 0x156   :  { %1807 = vmatprep.subr.bf16.mxu0 %v3462_v25  ;;  %v3525_v25 = vld [vmem:[#allocation10 + $0x1f8] ss:$12 sps:$4 sm:$0xff]  }
 0x159   :  { %1808 = vmatpush1.bf16.msra.mxu0 %v3460_v26  ;;  %v3529_v26 = vld [vmem:[#allocation10 + $0x200] ss:$12 sps:$4 sm:$0xff]  }
 0x15a   :  { %1809 = vmatprep.subr.bf16.mxu0 %v3467_v27  ;;  %v3969_v27 = vsub.s32 5, %v3944_v44 }
 0x15d   :  { %1810 = vmatpush1.bf16.msra.mxu0 %v3465_v28  ;;  %v229_v28 = vrot.slane %v3949_v46, %v3966_v22 }
 0x15e   :  { %1811 = vmatprep.subr.bf16.mxu0 %v3472_v29  ;;  %v3532_v29 = vld [vmem:[#allocation10 + $0x214] ss:$12 sps:$4 sm:$0xff]  }
 0x161   :  { %1812 = vmatpush1.bf16.msra.mxu0 %v3470_v30  ;;  %v3533_v30 = vld [vmem:[#allocation10 + $0x2d8] ss:$12 sps:$4 sm:$0xff]  }
 0x162   :  { %1813 = vmatprep.subr.bf16.mxu0 %v3477_v31  ;;  %v241_v31 = vrot.slane %v3949_v46, %v3969_v27 }
 0x165   :  { %1814 = vmatpush1.bf16.msra.mxu0 %v3475_v32  ;;  %v3530_v32 = vld [vmem:[#allocation10 + $0x210] ss:$12 sps:$4 sm:$0xff]  }
 0x166   :  { %1815 = vmatprep.subr.bf16.mxu0 %v3482_v33  ;;  %v3534_v33 = vld [vmem:[#allocation10 + $0x218] ss:$12 sps:$4 sm:$0xff]  }
 0x169   :  { %1816 = vmatpush1.bf16.msra.mxu0 %v3480_v34 }
 0x16a   :  { %1817 = vmatprep.subr.bf16.mxu0 %v3487_v35  ;;  %v3537_v35 = vld [vmem:[#allocation10 + $0x22c] ss:$12 sps:$4 sm:$0xff]  }
 0x16d   :  { %1818 = vmatpush1.bf16.msra.mxu0 %v3485_v36  ;;  %v3538_v36 = vld [vmem:[#allocation10 + $0x2f0] ss:$12 sps:$4 sm:$0xff]  }
 0x16e   :  { %1819 = vmatprep.subr.bf16.mxu0 %v3492_v37 }
 0x171   :  { %1820 = vmatpush1.bf16.msra.mxu0 %v3490_v38 }
 0x172   :  { %1821 = vmatprep.subr.bf16.mxu0 %v3497_v39 }
 0x175   :  { %1822 = vmatpush1.bf16.msra.mxu0 %v3495_v40 }
 0x176   :  { %1832 = vmatprep.subr.bf16.mxu0 %v3502_v41  ;;  %v3535_v41 = vld [vmem:[#allocation10 + $0x228] ss:$12 sps:$4 sm:$0xff]  }
 0x1ab   :  { %v882_v52 = vpop.f32.mrb[0].mxu0  ;;  %v3963_v53 = vpop.f32.mrb[0].mxu1 }
 0x1ac   :  { %v883_v54 = vadd.f32 %v882_v52, %v221_v49  ;;  %v884_v55 = vpop.f32.mrb[1].mxu0  ;;  %v925_v56 = vpop.f32.mrb[1].mxu1  ;;  %v924_v34 = vadd.f32 %v3963_v53, %v229_v28  ;;  %v3539_v52 = vld [vmem:[#allocation10 + $0x230] ss:$12 sps:$4 sm:$0xff]  }
 0x1ad   :  { %v885_v1 = vadd.f32 %v884_v55, %v225_v50  ;;  %v926_v57 = vadd.f32 %v925_v56, %v233_v51  ;;  %v886_v58 = vpop.f32.mrb[2].mxu0  ;;  %v927_v59 = vpop.f32.mrb[2].mxu1 }
 0x1ae   :  { %v1135_v60 = vmax.f32 %v883_v54, 0.0  ;;  %v887_v61 = vpop.f32.mrb[3].mxu0  ;;  %v928_v62 = vpop.f32.mrb[3].mxu1  ;;  %v3542_v54 = vld [vmem:[#allocation10 + $0x244] ss:$12 sps:$4 sm:$0xff]   ;;  %v1137_v53 = vmax.f32 %v924_v34, 0.0 }
 0x1af   :  { %v1136_v63 = vmax.f32 %v885_v1, 0.0  ;;  %v1138_v0 = vmax.f32 %v926_v57, 0.0  ;;  %v3545_v1 = vld [vmem:[#allocation10 + $0x304] ss:$12 sps:$4 sm:$0xff]   ;;  %v3540_v58 = vld [vmem:[#allocation10 + $0x240] ss:$12 sps:$4 sm:$0xff]  }
 0x1b0   :  { %v1139_v5 = vpack.c.bf16 %v1135_v60, %v1135_v60  ;;  %v3543_v59 = vld [vmem:[#allocation10 + $0x300] ss:$12 sps:$4 sm:$0xff]   ;;  %v3982_v60 = vpack.c.bf16 %v1137_v53, %v1137_v53  ;;  %v3548_v61 = vld [vmem:[#allocation10 + $0x25c] ss:$12 sps:$4 sm:$0xff]  }
 0x1b1   :  { %v1140_v2 = vpack.c.bf16 %v1136_v63, %v1136_v63  ;;  %v1142_v8 = vpack.c.bf16 %v1138_v0, %v1138_v0  ;;  %v3551_v62 = vld [vmem:[#allocation10 + $0x31c] ss:$12 sps:$4 sm:$0xff]   ;;  %v3546_v0 = vld [vmem:[#allocation10 + $0x258] ss:$12 sps:$4 sm:$0xff]   ;;  %v3588_v34 = vld [vmem:[#allocation10 + $0x3c0] ss:$12 sps:$4 sm:$0xff]  }
 0x1b2   :  { %v3605_v53 = vld [vmem:[#allocation10 + $0x40c] ss:$12 sps:$4 sm:$0xff]  }
 0x1b3   :  { %1823 = vmatprep.mubr.bf16.mxu0 %v1140_v2  ;;  %1905 = vmatprep.mubr.bf16.mxu1 %v1140_v2  ;;  %v3549_v2 = vld [vmem:[#allocation10 + $0x318] ss:$12 sps:$4 sm:$0xff]  }
 0x1b4   :  { %1824 = vmatmul.mubr.bf16.vlgmr.msra.gmra.mrb[8].mxu0 %v1139_v5  ;;  %1906 = vmatmul.mubr.bf16.vlgmr.msra.gmra.mrb[12].mxu1 %v1139_v5  ;;  %v3552_v5 = vld [vmem:[#allocation10 + $0x270] ss:$12 sps:$4 sm:$0xff]  }
 0x1b5   :  { %1833 = vmatpush1.bf16.msra.mxu0 %v3500_v3  ;;  %3181 = vmatpush3.bf16.msra.mxu1 %v3504_v4  ;;  %v3554_v3 = vld [vmem:[#allocation10 + $0x274] ss:$12 sps:$4 sm:$0xff]  }
 0x1b6   :  { %1864 = vmatprep.mubr.bf16.mxu0 %v1142_v8  ;;  %1945 = vmatprep.mubr.bf16.mxu1 %v1142_v8  ;;  %v3557_v4 = vld [vmem:[#allocation10 + $0x334] ss:$12 sps:$4 sm:$0xff]   ;;  %v3563_v8 = vld [vmem:[#allocation10 + $0x34c] ss:$12 sps:$4 sm:$0xff]  }
 0x1b7   :  { %1834 = vmatprep.subr.bf16.mxu0 %v3507_v6  ;;  %3182 = vmatprep.subr.bf16.mxu1 %v3508_v7  ;;  %v3555_v6 = vld [vmem:[#allocation10 + $0x330] ss:$12 sps:$4 sm:$0xff]   ;;  %v3560_v7 = vld [vmem:[#allocation10 + $0x28c] ss:$12 sps:$4 sm:$0xff]  }
 0x1b9   :  { %1835 = vmatpush1.bf16.msra.mxu0 %v3505_v9  ;;  %3183 = vmatpush3.bf16.msra.mxu1 %v3509_v10  ;;  %v3558_v9 = vld [vmem:[#allocation10 + $0x288] ss:$12 sps:$4 sm:$0xff]  }
 0x1ba   :  { %1836 = vmatprep.subr.bf16.mxu0 %v3512_v11  ;;  %3184 = vmatprep.subr.bf16.mxu1 %v3513_v12  ;;  %v3561_v10 = vld [vmem:[#allocation10 + $0x348] ss:$12 sps:$4 sm:$0xff]   ;;  %v3566_v11 = vld [vmem:[#allocation10 + $0x2a4] ss:$12 sps:$4 sm:$0xff]  }
 0x1bb   :  { %v3569_v12 = vld [vmem:[#allocation10 + $0x364] ss:$12 sps:$4 sm:$0xff]  }
 0x1bd   :  { %1837 = vmatpush1.bf16.msra.mxu0 %v3510_v13  ;;  %3185 = vmatpush3.bf16.msra.mxu1 %v3514_v14  ;;  %v3564_v13 = vld [vmem:[#allocation10 + $0x2a0] ss:$12 sps:$4 sm:$0xff]  }
 0x1be   :  { %1838 = vmatprep.subr.bf16.mxu0 %v3517_v15  ;;  %3186 = vmatprep.subr.bf16.mxu1 %v3518_v16  ;;  %v3567_v14 = vld [vmem:[#allocation10 + $0x360] ss:$12 sps:$4 sm:$0xff]   ;;  %v3572_v15 = vld [vmem:[#allocation10 + $0x2bc] ss:$12 sps:$4 sm:$0xff]  }
 0x1bf   :  { %v3575_v16 = vld [vmem:[#allocation10 + $0x37c] ss:$12 sps:$4 sm:$0xff]  }
 0x1c1   :  { %1839 = vmatpush1.bf16.msra.mxu0 %v3515_v17  ;;  %3187 = vmatpush3.bf16.msra.mxu1 %v3519_v18  ;;  %v3570_v17 = vld [vmem:[#allocation10 + $0x2b8] ss:$12 sps:$4 sm:$0xff]  }
 0x1c2   :  { %1840 = vmatprep.subr.bf16.mxu0 %v3522_v19  ;;  %3188 = vmatprep.subr.bf16.mxu1 %v3523_v20  ;;  %v3573_v18 = vld [vmem:[#allocation10 + $0x378] ss:$12 sps:$4 sm:$0xff]   ;;  %v3578_v19 = vld [vmem:[#allocation10 + $0x2d4] ss:$12 sps:$4 sm:$0xff]  }
 0x1c3   :  { %v3581_v20 = vld [vmem:[#allocation10 + $0x394] ss:$12 sps:$4 sm:$0xff]  }
 0x1c5   :  { %1841 = vmatpush1.bf16.msra.mxu0 %v3520_v21  ;;  %3189 = vmatpush3.bf16.msra.mxu1 %v3524_v43  ;;  %v3576_v21 = vld [vmem:[#allocation10 + $0x2d0] ss:$12 sps:$4 sm:$0xff]  }
 0x1c6   :  { %1842 = vmatprep.subr.bf16.mxu0 %v3527_v23  ;;  %3190 = vmatprep.subr.bf16.mxu1 %v3528_v24  ;;  %v3579_v43 = vld [vmem:[#allocation10 + $0x390] ss:$12 sps:$4 sm:$0xff]   ;;  %v3584_v23 = vld [vmem:[#allocation10 + $0x2ec] ss:$12 sps:$4 sm:$0xff]  }
 0x1c7   :  { %v3587_v24 = vld [vmem:[#allocation10 + $0x3ac] ss:$12 sps:$4 sm:$0xff]  }
 0x1c9   :  { %1843 = vmatpush1.bf16.msra.mxu0 %v3525_v25  ;;  %3191 = vmatpush3.bf16.msra.mxu1 %v3529_v26 }
 0x1ca   :  { %1844 = vmatprep.subr.bf16.mxu0 %v3532_v29  ;;  %3192 = vmatprep.subr.bf16.mxu1 %v3533_v30  ;;  %v3582_v29 = vld [vmem:[#allocation10 + $0x2e8] ss:$12 sps:$4 sm:$0xff]  }
 0x1cb   :  { %v3976_v37 = vpop.f32.mrb[4].mxu0  ;;  %v3978_v38 = vpop.f32.mrb[4].mxu1  ;;  %v3585_v30 = vld [vmem:[#allocation10 + $0x3a8] ss:$12 sps:$4 sm:$0xff]  }
 0x1cc   :  { %v966_v39 = vpop.f32.mrb[5].mxu0  ;;  %v3980_v40 = vpop.f32.mrb[5].mxu1 }
 0x1cd   :  { %v967_v49 = vadd.f32 %v966_v39, %v241_v31  ;;  %v968_v50 = vpop.f32.mrb[6].mxu0  ;;  %v1009_v51 = vpop.f32.mrb[6].mxu1  ;;  %1845 = vmatpush1.bf16.msra.mxu0 %v3530_v32  ;;  %3193 = vmatpush3.bf16.msra.mxu1 %v3534_v33  ;;  %v3590_v32 = vld [vmem:[#allocation10 + $0x3c4] ss:$12 sps:$4 sm:$0xff]   ;;  %v3591_v33 = vld [vmem:[#allocation10 + $0x3c8] ss:$12 sps:$4 sm:$0xff]  }
 0x1ce   :  { %v969_v55 = vpop.f32.mrb[7].mxu0  ;;  %v1010_v56 = vpop.f32.mrb[7].mxu1  ;;  %1846 = vmatprep.subr.bf16.mxu0 %v3537_v35  ;;  %3194 = vmatprep.subr.bf16.mxu1 %v3538_v36  ;;  %v3592_v35 = vld [vmem:[#allocation10 + $0x308] ss:$12 sps:$4 sm:$0xff]   ;;  %v3596_v39 = vld [vmem:[#allocation10 + $0x3e0] ss:$12 sps:$4 sm:$0xff]  }
 0x1cf   :  { %v1144_v57 = vmax.f32 %v967_v49, 0.0  ;;  %v3595_v36 = vld [vmem:[#allocation10 + $0x3dc] ss:$12 sps:$4 sm:$0xff]   ;;  %v3597_v49 = vld [vmem:[#allocation10 + $0x320] ss:$12 sps:$4 sm:$0xff]  }
 0x1d0   :  { %v3600_v50 = vld [vmem:[#allocation10 + $0x3f4] ss:$12 sps:$4 sm:$0xff]   ;;  %v3601_v51 = vld [vmem:[#allocation10 + $0x3f8] ss:$12 sps:$4 sm:$0xff]   ;;  %v3606_v55 = vld [vmem:[#allocation10 + $0x410] ss:$12 sps:$4 sm:$0xff]  }
 0x1d1   :  { %1847 = vmatpush1.bf16.msra.mxu0 %v3535_v41  ;;  %3195 = vmatpush3.bf16.msra.mxu1 %v3539_v52  ;;  %v3984_v63 = vpack.c.bf16 %v1144_v57, %v1144_v57  ;;  %v3593_v41 = vld [vmem:[#allocation10 + $0x3d8] ss:$12 sps:$4 sm:$0xff]   ;;  %v3598_v52 = vld [vmem:[#allocation10 + $0x3f0] ss:$12 sps:$4 sm:$0xff]   ;;  %v3603_v56 = vld [vmem:[#allocation10 + $0x408] ss:$12 sps:$4 sm:$0xff]  }
 0x1d2   :  { %1848 = vmatprep.subr.bf16.mxu0 %v3542_v54  ;;  %2597 = vmatprep.subr.bf16.mxu1 %v3545_v1  ;;  %v3602_v54 = vld [vmem:[#allocation10 + $0x338] ss:$12 sps:$4 sm:$0xff]   ;;  %v3607_v1 = vld [vmem:[#allocation10 + $0x350] ss:$12 sps:$4 sm:$0xff]  }
 0x1d3   :  { %v3610_v57 = vld [vmem:[#allocation10 + $0x424] ss:$12 sps:$4 sm:$0xff]  }
 0x1d4   :  { %1946 = vmatmul.mubr.bf16.vlgmr.msra.gmra.mrb[16].mxu1 %v3982_v60 }
 0x1d5   :  { %1849 = vmatpush1.bf16.msra.mxu0 %v3540_v58  ;;  %2598 = vmatpush1.bf16.msra.mxu1 %v3543_v59  ;;  %v3611_v58 = vld [vmem:[#allocation10 + $0x428] ss:$12 sps:$4 sm:$0xff]   ;;  %v3608_v59 = vld [vmem:[#allocation10 + $0x420] ss:$12 sps:$4 sm:$0xff]  }
 0x1d6   :  { %2629 = vmatprep.mubr.bf16.mxu1 %v3984_v63  ;;  %1850 = vmatprep.subr.bf16.mxu0 %v3548_v61  ;;  %v3995_v61 = vsub.s32 4, %v3944_v44 }
 0x1d7   :  { %2599 = vmatprep.subr.bf16.mxu1 %v3551_v62  ;;  %v3615_v62 = vld [vmem:[#allocation10 + $0x43c] ss:$12 sps:$4 sm:$0xff]  }
 0x1d9   :  { %1851 = vmatpush1.bf16.msra.mxu0 %v3546_v0  ;;  %2600 = vmatpush1.bf16.msra.mxu1 %v3549_v2  ;;  %v248_v0 = vsub.s32 7, %v3944_v44  ;;  %v3613_v2 = vld [vmem:[#allocation10 + $0x438] ss:$12 sps:$4 sm:$0xff]  }
 0x1da   :  { %1852 = vmatprep.subr.bf16.mxu0 %v3554_v3  ;;  %2601 = vmatprep.subr.bf16.mxu1 %v3557_v4  ;;  %v3617_v3 = vld [vmem:[#allocation10 + $0x380] ss:$12 sps:$4 sm:$0xff]   ;;  %v237_v4 = vrot.slane %v3949_v46, %v3995_v61 }
 0x1dd   :  { %1853 = vmatpush1.bf16.msra.mxu0 %v3552_v5  ;;  %2602 = vmatpush1.bf16.msra.mxu1 %v3555_v6  ;;  %v3620_v5 = vld [vmem:[#allocation10 + $0x454] ss:$12 sps:$4 sm:$0xff]   ;;  %v3621_v6 = vld [vmem:[#allocation10 + $0x458] ss:$12 sps:$4 sm:$0xff]  }
 0x1de   :  { %1854 = vmatprep.subr.bf16.mxu0 %v3560_v7  ;;  %2603 = vmatprep.subr.bf16.mxu1 %v3563_v8  ;;  %v249_v7 = vrot.slane %v3949_v46, %v248_v0  ;;  %v3618_v8 = vld [vmem:[#allocation10 + $0x450] ss:$12 sps:$4 sm:$0xff]   ;;  %v3662_v0 = vld [vmem:[#allocation10 + $0x518] ss:$12 sps:$4 sm:$0xff]  }
 0x1e1   :  { %1855 = vmatpush1.bf16.msra.mxu0 %v3558_v9  ;;  %2604 = vmatpush1.bf16.msra.mxu1 %v3561_v10  ;;  %v3622_v9 = vld [vmem:[#allocation10 + $0x398] ss:$12 sps:$4 sm:$0xff]   ;;  %v965_v10 = vadd.f32 %v3976_v37, %v237_v4  ;;  %v3663_v4 = vld [vmem:[#allocation10 + $0x528] ss:$12 sps:$4 sm:$0xff]  }
 0x1e2   :  { %1856 = vmatprep.subr.bf16.mxu0 %v3566_v11  ;;  %2605 = vmatprep.subr.bf16.mxu1 %v3569_v12  ;;  %v3625_v11 = vld [vmem:[#allocation10 + $0x46c] ss:$12 sps:$4 sm:$0xff]   ;;  %v3626_v12 = vld [vmem:[#allocation10 + $0x470] ss:$12 sps:$4 sm:$0xff]  }
 0x1e3   :  { %v3630_v37 = vld [vmem:[#allocation10 + $0x484] ss:$12 sps:$4 sm:$0xff]  }
 0x1e5   :  { %1857 = vmatpush1.bf16.msra.mxu0 %v3564_v13  ;;  %2606 = vmatpush1.bf16.msra.mxu1 %v3567_v14  ;;  %v1008_v13 = vadd.f32 %v3980_v40, %v249_v7 }
 0x1e6   :  { %1858 = vmatprep.subr.bf16.mxu0 %v3572_v15  ;;  %2607 = vmatprep.subr.bf16.mxu1 %v3575_v16 }
 0x1e9   :  { %1859 = vmatpush1.bf16.msra.mxu0 %v3570_v17  ;;  %2608 = vmatpush1.bf16.msra.mxu1 %v3573_v18  ;;  %v3623_v17 = vld [vmem:[#allocation10 + $0x468] ss:$12 sps:$4 sm:$0xff]   ;;  %v3627_v18 = vld [vmem:[#allocation10 + $0x3b0] ss:$12 sps:$4 sm:$0xff]  }
 0x1ea   :  { %1860 = vmatprep.subr.bf16.mxu0 %v3578_v19  ;;  %2609 = vmatprep.subr.bf16.mxu1 %v3581_v20  ;;  %v1143_v19 = vmax.f32 %v965_v10, 0.0  ;;  %v3671_v10 = vld [vmem:[#allocation10 + $0x558] ss:$12 sps:$4 sm:$0xff]  }
 0x1eb   :  { %v3988_v25 = vpop.f32.mrb[8].mxu1 }
 0x1ec   :  { %v3990_v26 = vpop.f32.mrb[9].mxu1  ;;  %v1147_v40 = vpack.c.bf16 %v1143_v19, %v1143_v19  ;;  %v3683_v19 = vld [vmem:[#allocation10 + $0x5b8] ss:$12 sps:$4 sm:$0xff]  }
 0x1ed   :  { %v1091_v28 = vpop.f32.mrb[10].mxu1  ;;  %1861 = vmatpush1.bf16.msra.mxu0 %v3576_v21  ;;  %2610 = vmatpush1.bf16.msra.mxu1 %v3579_v43  ;;  %v3631_v21 = vld [vmem:[#allocation10 + $0x548] ss:$12 sps:$4 sm:$0xff]   ;;  %v1146_v43 = vmax.f32 %v1008_v13, 0.0 }
 0x1ee   :  { %v1092_v31 = vpop.f32.mrb[11].mxu1  ;;  %1862 = vmatprep.subr.bf16.mxu0 %v3584_v23  ;;  %2611 = vmatprep.subr.bf16.mxu1 %v3587_v24  ;;  %v3628_v23 = vld [vmem:[#allocation10 + $0x480] ss:$12 sps:$4 sm:$0xff]   ;;  %v3632_v24 = vld [vmem:[#allocation10 + $0x488] ss:$12 sps:$4 sm:$0xff]  }
 0x1ef   :  { %v1150_v28 = vpack.c.bf16 %v1146_v43, %v1146_v43  ;;  %v3633_v31 = vld [vmem:[#allocation10 + $0x498] ss:$12 sps:$4 sm:$0xff]   ;;  %v3677_v13 = vld [vmem:[#allocation10 + $0x588] ss:$12 sps:$4 sm:$0xff]  }
 0x1f0   :  { %v3689_v43 = vld [vmem:[#allocation10 + $0x5e8] ss:$12 sps:$4 sm:$0xff]  }
 0x1f1   :  { %1863 = vmatpush1.bf16.msra.mxu0 %v3582_v29  ;;  %2612 = vmatpush1.bf16.msra.mxu1 %v3585_v30  ;;  %v3635_v29 = vld [vmem:[#allocation10 + $0x49c] ss:$12 sps:$4 sm:$0xff]   ;;  %v3636_v30 = vld [vmem:[#allocation10 + $0x560] ss:$12 sps:$4 sm:$0xff]  }
 0x1f2   :  { %2613 = vmatprep.subr.bf16.mxu1 %v3590_v32  ;;  %3202 = vmatprep.subr.bf16.mxu0 %v3591_v33  ;;  %v3637_v32 = vld [vmem:[#allocation10 + $0x4a0] ss:$12 sps:$4 sm:$0xff]  }
 0x1f3   :  { %v3640_v33 = vld [vmem:[#allocation10 + $0x4b4] ss:$12 sps:$4 sm:$0xff]  }
 0x1f4   :  { %1865 = vmatmul.mubr.bf16.vlgmr.msra.gmra.mrb[8].mxu0 %v3982_v60  ;;  %v3612_v60 = vld [vmem:[#allocation10 + $0x368] ss:$12 sps:$4 sm:$0xff]  }
 0x1f5   :  { %2614 = vmatpush1.bf16.msra.mxu1 %v3588_v34  ;;  %3203 = vmatpush3.bf16.msra.mxu0 %v3592_v35  ;;  %v3641_v34 = vld [vmem:[#allocation10 + $0x578] ss:$12 sps:$4 sm:$0xff]   ;;  %v3638_v35 = vld [vmem:[#allocation10 + $0x4b0] ss:$12 sps:$4 sm:$0xff]  }
 0x1f6   :  { %2711 = vmatprep.mubr.bf16.mxu0 %v3984_v63  ;;  %2615 = vmatprep.subr.bf16.mxu1 %v3595_v36  ;;  %v3616_v63 = vld [vmem:[#allocation10 + $0x440] ss:$12 sps:$4 sm:$0xff]   ;;  %v3642_v36 = vld [vmem:[#allocation10 + $0x4b8] ss:$12 sps:$4 sm:$0xff]  }
 0x1f7   :  { %3204 = vmatprep.subr.bf16.mxu0 %v3596_v39  ;;  %v3645_v39 = vld [vmem:[#allocation10 + $0x4cc] ss:$12 sps:$4 sm:$0xff]  }
 0x1f9   :  { %2616 = vmatpush1.bf16.msra.mxu1 %v3593_v41  ;;  %3205 = vmatpush3.bf16.msra.mxu0 %v3597_v49  ;;  %v3646_v41 = vld [vmem:[#allocation10 + $0x590] ss:$12 sps:$4 sm:$0xff]   ;;  %v3643_v49 = vld [vmem:[#allocation10 + $0x4c8] ss:$12 sps:$4 sm:$0xff]  }
 0x1fa   :  { %2617 = vmatprep.subr.bf16.mxu1 %v3600_v50  ;;  %3206 = vmatprep.subr.bf16.mxu0 %v3601_v51  ;;  %v3647_v50 = vld [vmem:[#allocation10 + $0x4d0] ss:$12 sps:$4 sm:$0xff]  }
 0x1fb   :  { %v3650_v51 = vld [vmem:[#allocation10 + $0x4e4] ss:$12 sps:$4 sm:$0xff]  }
 0x1fd   :  { %2618 = vmatpush1.bf16.msra.mxu1 %v3598_v52  ;;  %3207 = vmatpush3.bf16.msra.mxu0 %v3602_v54  ;;  %v3651_v52 = vld [vmem:[#allocation10 + $0x5a8] ss:$12 sps:$4 sm:$0xff]   ;;  %v3648_v54 = vld [vmem:[#allocation10 + $0x4e0] ss:$12 sps:$4 sm:$0xff]  }
 0x1fe   :  { %2619 = vmatprep.subr.bf16.mxu1 %v3605_v53  ;;  %3208 = vmatprep.subr.bf16.mxu0 %v3606_v55  ;;  %v3652_v53 = vld [vmem:[#allocation10 + $0x4e8] ss:$12 sps:$4 sm:$0xff]  }
 0x1ff   :  { %v3655_v55 = vld [vmem:[#allocation10 + $0x4fc] ss:$12 sps:$4 sm:$0xff]  }
 0x201   :  { %2620 = vmatpush1.bf16.msra.mxu1 %v3603_v56  ;;  %3209 = vmatpush3.bf16.msra.mxu0 %v3607_v1  ;;  %v244_v56 = vsub.s32 6, %v3944_v44  ;;  %v3656_v1 = vld [vmem:[#allocation10 + $0x5c0] ss:$12 sps:$4 sm:$0xff]  }
 0x202   :  { %2621 = vmatprep.subr.bf16.mxu1 %v3610_v57  ;;  %3210 = vmatprep.subr.bf16.mxu0 %v3611_v58  ;;  %v3653_v57 = vld [vmem:[#allocation10 + $0x4f8] ss:$12 sps:$4 sm:$0xff]   ;;  %v3657_v58 = vld [vmem:[#allocation10 + $0x500] ss:$12 sps:$4 sm:$0xff]  }
 0x205   :  { %2622 = vmatpush1.bf16.msra.mxu1 %v3608_v59  ;;  %3211 = vmatpush3.bf16.msra.mxu0 %v3612_v60  ;;  %v3660_v59 = vld [vmem:[#allocation10 + $0x514] ss:$12 sps:$4 sm:$0xff]   ;;  %v245_v60 = vrot.slane %v3949_v46, %v244_v56 }
 0x206   :  { %2623 = vmatprep.subr.bf16.mxu1 %v3615_v62  ;;  %3212 = vmatprep.subr.bf16.mxu0 %v3616_v63  ;;  %v3661_v62 = vld [vmem:[#allocation10 + $0x5d8] ss:$12 sps:$4 sm:$0xff]   ;;  %v3658_v63 = vld [vmem:[#allocation10 + $0x510] ss:$12 sps:$4 sm:$0xff]   ;;  %v3668_v46 = vld [vmem:[#allocation10 + $0x540] ss:$12 sps:$4 sm:$0xff]  }
 0x207   :  { %v1006_v44 = vadd.f32 %v3978_v38, %v245_v60  ;;  %v3676_v38 = vld [vmem:[#allocation10 + $0x574] ss:$12 sps:$4 sm:$0xff]  }
 0x209   :  { %2624 = vmatpush1.bf16.msra.mxu1 %v3613_v2  ;;  %3213 = vmatpush3.bf16.msra.mxu0 %v3617_v3  ;;  %v3665_v2 = vld [vmem:[#allocation10 + $0x52c] ss:$12 sps:$4 sm:$0xff]   ;;  %v3666_v3 = vld [vmem:[#allocation10 + $0x5f0] ss:$12 sps:$4 sm:$0xff]   ;;  %v1145_v7 = vmax.f32 %v1006_v44, 0.0 }
 0x20a   :  { %2625 = vmatprep.subr.bf16.mxu1 %v3620_v5  ;;  %3214 = vmatprep.subr.bf16.mxu0 %v3621_v6  ;;  %v3667_v5 = vld [vmem:[#allocation10 + $0x530] ss:$12 sps:$4 sm:$0xff]  }
 0x20b   :  { %v4003_v14 = vpop.f32.mrb[12].mxu0  ;;  %v3670_v6 = vld [vmem:[#allocation10 + $0x544] ss:$12 sps:$4 sm:$0xff]  }
 0x20c   :  { %v4005_v15 = vpop.f32.mrb[13].mxu0 }
 0x20d   :  { %v1132_v16 = vpop.f32.mrb[14].mxu0  ;;  %2626 = vmatpush1.bf16.msra.mxu1 %v3618_v8  ;;  %3215 = vmatpush3.bf16.msra.mxu0 %v3622_v9  ;;  %v3673_v8 = vld [vmem:[#allocation10 + $0x55c] ss:$12 sps:$4 sm:$0xff]   ;;  %v1149_v9 = vpack.c.bf16 %v1145_v7, %v1145_v7 }
 0x20e   :  { %v1133_v20 = vpop.f32.mrb[15].mxu0  ;;  %2627 = vmatprep.subr.bf16.mxu1 %v3625_v11  ;;  %3216 = vmatprep.subr.bf16.mxu0 %v3626_v12  ;;  %v3674_v11 = vld [vmem:[#allocation10 + $0x570] ss:$12 sps:$4 sm:$0xff]   ;;  %v3679_v12 = vld [vmem:[#allocation10 + $0x58c] ss:$12 sps:$4 sm:$0xff]  }
 0x20f   :  { %v3682_v16 = vld [vmem:[#allocation10 + $0x5a4] ss:$12 sps:$4 sm:$0xff]   ;;  %v3688_v20 = vld [vmem:[#allocation10 + $0x5d4] ss:$12 sps:$4 sm:$0xff]  }
 0x211   :  { %2628 = vmatpush1.bf16.msra.mxu1 %v3623_v17  ;;  %3217 = vmatpush3.bf16.msra.mxu0 %v3627_v18  ;;  %v3680_v17 = vld [vmem:[#allocation10 + $0x5a0] ss:$12 sps:$4 sm:$0xff]   ;;  %v3685_v18 = vld [vmem:[#allocation10 + $0x5bc] ss:$12 sps:$4 sm:$0xff]  }
 0x212   :  { %2638 = vmatprep.subr.bf16.mxu1 %v3630_v37  ;;  %3224 = vmatprep.subr.bf16.mxu0 %v3631_v21  ;;  %v3686_v37 = vld [vmem:[#allocation10 + $0x5d0] ss:$12 sps:$4 sm:$0xff]   ;;  %v3691_v21 = vld [vmem:[#allocation10 + $0x5ec] ss:$12 sps:$4 sm:$0xff]  }
 0x214   :  { %2630 = vmatmul.mubr.bf16.vlgmr.msra.gmra.mrb[20].mxu1 %v1147_v40  ;;  %2712 = vmatmul.mubr.bf16.vlgmr.msra.gmra.mrb[16].mxu0 %v1147_v40 }
 0x215   :  { %2639 = vmatpush1.bf16.msra.mxu1 %v3628_v23  ;;  %2670 = vmatprep.mubr.bf16.mxu1 %v1150_v28  ;;  %v215_v23 = vld [vmem:[#allocation8 + $0x8] sm:$0x3f] }
 0x216   :  { %3225 = vmatpush3.bf16.msra.mxu0 %v3632_v24  ;;  %2751 = vmatprep.mubr.bf16.mxu0 %v1150_v28  ;;  %v261_v40 = vrot.slane %v215_v23, %v3966_v22  ;;  %v265_v7 = vrot.slane %v215_v23, %v3955_v48 }
 0x217   :  { %2640 = vmatprep.subr.bf16.mxu1 %v3635_v29  ;;  %3226 = vmatprep.subr.bf16.mxu0 %v3636_v30 }
 0x218   :  { %v1088_v29 = vadd.f32 %v3988_v25, %v261_v40 }
 0x219   :  { %2641 = vmatpush1.bf16.msra.mxu1 %v3633_v31 }
 0x21a   :  { %3227 = vmatpush3.bf16.msra.mxu0 %v3637_v32  ;;  %2642 = vmatprep.subr.bf16.mxu1 %v3640_v33 }
 0x21b   :  { %3228 = vmatprep.subr.bf16.mxu0 %v3641_v34 }
 0x21d   :  { %2643 = vmatpush1.bf16.msra.mxu1 %v3638_v35 }
 0x21e   :  { %3229 = vmatpush3.bf16.msra.mxu0 %v3642_v36  ;;  %2644 = vmatprep.subr.bf16.mxu1 %v3645_v39 }
 0x21f   :  { %3230 = vmatprep.subr.bf16.mxu0 %v3646_v41 }
 0x221   :  { %2645 = vmatpush1.bf16.msra.mxu1 %v3643_v49 }
 0x222   :  { %3231 = vmatpush3.bf16.msra.mxu0 %v3647_v50  ;;  %2646 = vmatprep.subr.bf16.mxu1 %v3650_v51  ;;  %v4015_v50 = vld [vmem:[%s4055_s5] sm:$0x3f]  ;;  %v253_v51 = vrot.slane %v215_v23, %v3947_v45 }
 0x223   :  { %3232 = vmatprep.subr.bf16.mxu0 %v3651_v52  ;;  %v2767_v25 = vrot.slane %v4015_v50, %v3947_v45  ;;  %v257_v52 = vrot.slane %v215_v23, %v3952_v47 }
 0x225   :  { %2647 = vmatpush1.bf16.msra.mxu1 %v3648_v54  ;;  %v2771_v54 = vrot.slane %v4015_v50, %v3966_v22 }
 0x226   :  { %3233 = vmatpush3.bf16.msra.mxu0 %v3652_v53  ;;  %2648 = vmatprep.subr.bf16.mxu1 %v3655_v55  ;;  %v2775_v55 = vrot.slane %v4015_v50, %v3995_v61 }
 0x227   :  { %3234 = vmatprep.subr.bf16.mxu0 %v3656_v1  ;;  %v2782_v1 = vrot.slane %v2767_v25, %v3947_v45 }
 0x228   :  { %v2790_v44 = vrot.slane %v2775_v55, %v3947_v45 }
 0x229   :  { %2649 = vmatpush1.bf16.msra.mxu1 %v3653_v57 }
 0x22a   :  { %3235 = vmatpush3.bf16.msra.mxu0 %v3657_v58  ;;  %2650 = vmatprep.subr.bf16.mxu1 %v3660_v59  ;;  %v2786_v59 = vrot.slane %v2771_v54, %v3947_v45 }
 0x22b   :  { %3236 = vmatprep.subr.bf16.mxu0 %v3661_v62 }
 0x22d   :  { %2651 = vmatpush1.bf16.msra.mxu1 %v3658_v63 }
 0x22e   :  { %3237 = vmatpush3.bf16.msra.mxu0 %v3662_v0  ;;  %2652 = vmatprep.subr.bf16.mxu1 %v3665_v2 }
 0x22f   :  { %3238 = vmatprep.subr.bf16.mxu0 %v3666_v3 }
 0x231   :  { %2653 = vmatpush1.bf16.msra.mxu1 %v3663_v4 }
 0x232   :  { %3239 = vmatpush3.bf16.msra.mxu0 %v3667_v5  ;;  %2654 = vmatprep.subr.bf16.mxu1 %v3670_v6 }
 0x235   :  { %2752 = vmatmul.mubr.bf16.vlgmr.msra.gmra.mrb[20].mxu0 %v1149_v9  ;;  %2655 = vmatpush1.bf16.msra.mxu1 %v3668_v46  ;;  %v269_v46 = vrot.slane %v215_v23, %v3995_v61 }
 0x236   :  { %2656 = vmatprep.subr.bf16.mxu1 %v3673_v8  ;;  %v273_v8 = vrot.slane %v215_v23, %v3969_v27 }
 0x239   :  { %2657 = vmatpush1.bf16.msra.mxu1 %v3671_v10  ;;  %v1129_v10 = vadd.f32 %v4003_v14, %v269_v46 }
 0x23a   :  { %2658 = vmatprep.subr.bf16.mxu1 %v3676_v38 }
 0x23d   :  { %2659 = vmatpush1.bf16.msra.mxu1 %v3674_v11 }
 0x23e   :  { %2660 = vmatprep.subr.bf16.mxu1 %v3679_v12 }
 0x241   :  { %2661 = vmatpush1.bf16.msra.mxu1 %v3677_v13 }
 0x242   :  { %2662 = vmatprep.subr.bf16.mxu1 %v3682_v16  ;;  %v1131_v16 = vadd.f32 %v4005_v15, %v273_v8 }
 0x245   :  { %2663 = vmatpush1.bf16.msra.mxu1 %v3680_v17 }
 0x246   :  { %2664 = vmatprep.subr.bf16.mxu1 %v3685_v18 }
 0x249   :  { %2665 = vmatpush1.bf16.msra.mxu1 %v3683_v19 }
 0x24a   :  { %2666 = vmatprep.subr.bf16.mxu1 %v3688_v20 }
 0x24d   :  { %2667 = vmatpush1.bf16.msra.mxu1 %v3686_v37 }
 0x24e   :  { %2668 = vmatprep.subr.bf16.mxu1 %v3691_v21 }
 0x251   :  { %2669 = vmatpush1.bf16.msra.mxu1 %v3689_v43 }
 0x254   :  { %2671 = vmatmul.mubr.bf16.vlgmr.msra.gmra.mrb[24].mxu1 %v1149_v9  ;;  %v1090_v9 = vadd.f32 %v3990_v26, %v265_v7 }
 0x287   :  { %v3174_v24 = vpop.f32.mrb[12].mxu1 }
 0x288   :  { %v3175_v28 = vpop.f32.mrb[13].mxu1 }
 0x289   :  { %v3176_v30 = vadd.f32 %v3175_v28, %v3174_v24  ;;  %v3177_v31 = vpop.f32.mrb[14].mxu1  ;;  %v2801_v28 = vrot.slane %v4015_v50, %v3952_v47 }
 0x28a   :  { %v3178_v32 = vpop.f32.mrb[15].mxu1 }
 0x28b   :  { %v1908_v33 = vadd.f32 %v3176_v30, %v1088_v29  ;;  %v2805_v29 = vrot.slane %v4015_v50, %v3955_v48  ;;  %v2809_v30 = vrot.slane %v4015_v50, %v3969_v27  ;;  %v2816_v32 = vrot.slane %v2801_v28, %v3952_v47  ;;  %v3157_v50 = vld [vmem:[%s4056_s6] ss:$0 sm:$0xff] }
 0x28c   :  { %v2833_v27 = vand.u32 127, %v218_v42 }
 0x28d   :  { %v2824_v25 = vrot.slane %v2809_v30, %v3952_v47 }
 0x28e   :  { %vm2834_vm2 = vcmp.eq.s32.totalorder %v2833_v27, 0 }
 0x2a7   :  { %v3196_v34 = vpop.f32.mrb[16].mxu1 }
 0x2a8   :  { %v3197_v35 = vpop.f32.mrb[17].mxu1 }
 0x2a9   :  { %v3198_v36 = vadd.f32 %v3197_v35, %v3196_v34  ;;  %v3199_v39 = vpop.f32.mrb[18].mxu1  ;;  %v2820_v35 = vrot.slane %v2805_v29, %v3952_v47 }
 0x2aa   :  { %v3200_v41 = vpop.f32.mrb[19].mxu1 }
 0x2ab   :  { %v1948_v49 = vadd.f32 %v3198_v36, %v1908_v33 }
 0x2ad   :  { %v1955_v0 = vmax.f32 %v1948_v49, 0.0 }
 0x2af   :  { %v2793_v4 = vmul.f32 %v2790_v44, %v1955_v0 }
 0x2c7   :  { %v1866_v53 = vpop.f32.mrb[8].mxu0 }
 0x2c8   :  { %v3246_v56 = vadd.f32 %v1866_v53, %v253_v51  ;;  %v1868_v57 = vpop.f32.mrb[9].mxu0 }
 0x2c9   :  { %v3247_v58 = vadd.f32 %v1868_v57, %v257_v52  ;;  %v1870_v60 = vpop.f32.mrb[10].mxu0 }
 0x2ca   :  { %v1953_v62 = vmax.f32 %v3246_v56, 0.0  ;;  %v1871_v63 = vpop.f32.mrb[11].mxu0 }
 0x2cb   :  { %v1954_v2 = vmax.f32 %v3247_v58, 0.0 }
 0x2cc   :  { %v2791_v3 = vmul.f32 %v2782_v1, %v1953_v62 }
 0x2cd   :  { %v2792_v22 = vmul.f32 %v2786_v59, %v1954_v2 }
 0x2cf   :  { %v2794_v5 = vadd.f32 %v2792_v22, %v2791_v3 }
 0x2d1   :  { %v2795_v6 = vadd.f32 %v2794_v5, %v2793_v4 }
 0x2d3   :  { %2796 = vadd.xlane.f32.xlu0 %v2795_v6 }
 0x2e7   :  { %v2631_v38 = vpop.f32.mrb[20].mxu1  ;;  %v3218_v11 = vpop.f32.mrb[16].mxu0 }
 0x2e8   :  { %v2632_v12 = vadd.f32 %v2631_v38, %v1090_v9  ;;  %v2633_v45 = vpop.f32.mrb[21].mxu1  ;;  %v3219_v13 = vpop.f32.mrb[17].mxu0 }
 0x2e9   :  { %v2634_v17 = vadd.f32 %v2633_v45, %v1129_v10  ;;  %v3220_v18 = vadd.f32 %v3219_v13, %v3218_v11  ;;  %v2635_v19 = vpop.f32.mrb[22].mxu1  ;;  %v3221_v20 = vpop.f32.mrb[18].mxu0 }
 0x2ea   :  { %v2636_v37 = vpop.f32.mrb[23].mxu1  ;;  %v3222_v21 = vpop.f32.mrb[19].mxu0 }
 0x2eb   :  { %v2714_v61 = vadd.f32 %v3220_v18, %v1131_v16 }
 0x308   :  { %v3240_v43 = vpop.f32.mrb[20].mxu0 }
 0x309   :  { %v3241_v23 = vpop.f32.mrb[21].mxu0 }
 0x30a   :  { %v3242_v40 = vadd.f32 %v3241_v23, %v3240_v43  ;;  %v3243_v26 = vpop.f32.mrb[22].mxu0 }
 0x30b   :  { %v3244_v24 = vpop.f32.mrb[23].mxu0 }
 0x30c   :  { %v2754_v14 = vadd.f32 %v3242_v40, %v2714_v61 }
 0x30e   :  { %v2761_v49 = vmax.f32 %v2754_v14, 0.0 }
 0x310   :  { %v2827_v54 = vmul.f32 %v2824_v25, %v2761_v49 }
 0x327   :  { %v2672_v15 = vpop.f32.mrb[24].mxu1 }
 0x328   :  { %v2673_v31 = vadd.f32 %v2672_v15, %v2632_v12  ;;  %v2674_v33 = vpop.f32.mrb[25].mxu1 }
 0x329   :  { %v2675_v34 = vadd.f32 %v2674_v33, %v2634_v17  ;;  %v2676_v36 = vpop.f32.mrb[26].mxu1 }
 0x32a   :  { %v2759_v39 = vmax.f32 %v2673_v31, 0.0  ;;  %v2677_v41 = vpop.f32.mrb[27].mxu1 }
 0x32b   :  { %v2760_v51 = vmax.f32 %v2675_v34, 0.0 }
 0x32c   :  { %v2825_v52 = vmul.f32 %v2816_v32, %v2759_v39 }
 0x32d   :  { %v2826_v48 = vmul.f32 %v2820_v35, %v2760_v51 }
 0x32f   :  { %v2828_v53 = vadd.f32 %v2826_v48, %v2825_v52 }
 0x331   :  { %v2829_v55 = vadd.f32 %v2828_v53, %v2827_v54 }
 0x333   :  { %2830 = vadd.xlane.f32.xlu1 %v2829_v55 }
 0x360   :  { %v2797_v56 = vpop.xlane.xlu0 %2796 }
 0x3c0   :  { %v2831_v1 = vpop.xlane.xlu1 %2830 }
 0x3c1   :  { %v2835_v57 = vsel %vm2834_vm2, %v2797_v56, %v2831_v1 }
 0x3c2   :  { %v2843_v58 = vadd.f32 %v3157_v50, %v2835_v57 }
 0x3c4   :  { %2845 = vst.msk [vmem:[%s4057_s7] sm:$0xff] %vm2844_vm3, %v2843_v58 }
 0x3c5   :  { %2850 = vsyncpa [#allocation4], 1 }
 0x3c6   :  { %2851 = vsyncpa [#allocation6], 1 }
 0x3c7   :  { %2852 = vsyncpa [#allocation9], 1 }

</bundles_post_ra>
